<compile_context>
chip_gen: v7x
topology: tpu7x:2x2x1
jax: 0.10.0
libtpu: 0.0.40
codegen_flags: <defaults>
</compile_context>

<pallas_src>
import math
from functools import partial

import jax
import jax.numpy as jnp
from jax.experimental import pallas as pl
from jax.experimental.pallas import tpu as pltpu

LN_EPS = 1e-5  # torch.nn.LayerNorm default


# --------------------------------------------------------------------------- helpers
def _erf(x):
    # Abramowitz & Stegun 7.1.26, |err| < 1.5e-7 -> matches torch.nn.GELU() (exact erf).
    a1, a2, a3, a4, a5 = 0.254829592, -0.284496736, 1.421413741, -1.453152027, 1.061405429
    p = 0.3275911
    s = jnp.where(x >= 0.0, 1.0, -1.0)
    ax = jnp.abs(x)
    t = pl.reciprocal(1.0 + p * ax, approx=True)  # divide -> EUP slot (off the VALU)
    poly = ((((a5 * t + a4) * t + a3) * t + a2) * t + a1) * t
    return s * (1.0 - poly * jnp.exp(-ax * ax))


def _gelu_exact(x):
    return 0.5 * x * (1.0 + _erf(x * (1.0 / math.sqrt(2.0))))


def _layernorm(x, gamma, beta):
    mean = jnp.mean(x, axis=-1, keepdims=True)
    var = jnp.mean((x - mean) ** 2, axis=-1, keepdims=True)
    return (x - mean) * jax.lax.rsqrt(var + LN_EPS) * gamma + beta


# --------------------------------------------------------------- kernel 1: LN1 + K|V proj
def kv_project_kernel(x_ref, ln1_g_ref, ln1_b_ref, wkv_ref, bkv_ref, k_ref, v_ref,
                      *, n_heads, d_k):
    """LayerNorm1 + fused K|V projection for one (batch, seq-tile).

    Runs once per sequence position (hoisted out of the per-query-tile attention loop) and
    emits K/V in heads-major (H, T, d_k) bf16 so the attention kernel never re-transposes.
    """
    f32, bf16 = jnp.float32, jnp.bfloat16
    x = x_ref[0]                                     # (TT, D) f32
    TT, D = x.shape
    h = _layernorm(x, ln1_g_ref[...], ln1_b_ref[...])
    kv = jnp.dot(h.astype(bf16), wkv_ref[...], preferred_element_type=f32) + bkv_ref[...]
    k = kv[:, :D].reshape(TT, n_heads, d_k)
    v = kv[:, D:].reshape(TT, n_heads, d_k)
    k_ref[0] = pltpu.einshape("thd->htd", k).astype(bf16)
    v_ref[0] = pltpu.einshape("thd->htd", v).astype(bf16)


# ---------------------------------------------------- kernel 2: attention + residuals + FFN
def attention_block_kernel(
    xq_ref, k_ref, v_ref,
    ln1_g_ref, ln1_b_ref,
    wq_ref, bq_ref, wo_ref, bo_ref,
    ln2_g_ref, ln2_b_ref,
    w1_ref, b1_ref, w2_ref, b2_ref,
    o_ref,
    *, n_heads, d_k, kv_tile, exp_in_bf16,
):
    f32, bf16 = jnp.float32, jnp.bfloat16
    xq = xq_ref[0]                                   # (TQ, D) f32 residual-stream rows
    TQ, D = xq.shape
    H, dk = n_heads, d_k
    T = k_ref.shape[2]
    TK = kv_tile
    n_chunks = T // TK

    # LayerNorm1 on the query-tile rows only (the K/V path was precomputed in pass 1).
    hq = _layernorm(xq, ln1_g_ref[...], ln1_b_ref[...])

    # Q projection (1/sqrt(d_k) already folded into Wq / bq on the host), heads-major.
    q = jnp.dot(hq.astype(bf16), wq_ref[...], preferred_element_type=f32) + bq_ref[...]
    qh = pltpu.einshape("qhd->hqd", q.reshape(TQ, H, dk)).astype(bf16)   # (H, TQ, dk)

    # Flash-style online softmax over KV chunks: live scores bounded by (H, TQ, TK).
    m_run = jnp.full((H, TQ, 1), -jnp.inf, dtype=f32)
    l_run = jnp.zeros((H, TQ, 1), dtype=f32)
    acc = jnp.zeros((H, TQ, dk), dtype=f32)
    for c in range(n_chunks):                        # static trip count -> fully unrolled
        if n_chunks == 1:
            kh = k_ref[0]                            # (H, T, dk) bf16
            vh = v_ref[0]
        else:
            lo = c * TK
            kh = k_ref[0, :, lo:lo + TK, :]          # (H, TK, dk) bf16
            vh = v_ref[0, :, lo:lo + TK, :]
        s = jnp.einsum("hqd,hkd->hqk", qh, kh, preferred_element_type=f32)  # (H, TQ, TK)
        m_new = jnp.maximum(m_run, jnp.max(s, axis=-1, keepdims=True))
        alpha = jnp.exp(m_run - m_new)               # rescale of previous partials
        sh = s - m_new
        e = jnp.exp(sh.astype(bf16)) if exp_in_bf16 else jnp.exp(sh)
        l_run = alpha * l_run + jnp.sum(e, axis=-1, keepdims=True, dtype=f32)
        acc = alpha * acc + jnp.einsum("hqk,hkd->hqd", e.astype(bf16), vh,
                                       preferred_element_type=f32)
        m_run = m_new
    # TODO(synk): attn_dropout is identity (eval mode).

    ctx = acc * pl.reciprocal(l_run, approx=True)                        # (H, TQ, dk) f32
    ctx = pltpu.einshape("hqd->qhd", ctx).reshape(TQ, D)                 # concat heads
    attn = jnp.dot(ctx.astype(bf16), wo_ref[...], preferred_element_type=f32) + bo_ref[...]
    # TODO(synk): proj_dropout is identity (eval mode).

    x1 = xq + attn                                   # residual 1 (f32)

    h2 = _layernorm(x1, ln2_g_ref[...], ln2_b_ref[...])
    f = jnp.dot(h2.astype(bf16), w1_ref[...], preferred_element_type=f32) + b1_ref[...]
    f = _gelu_exact(f)
    f = jnp.dot(f.astype(bf16), w2_ref[...], preferred_element_type=f32) + b2_ref[...]
    # TODO(synk): FFN dropouts are identity (eval mode).

    o_ref[0] = x1 + f                                # residual 2


# --------------------------------------------------------------------------- wrapper
def _tpu_generation():
    try:
        kind = jax.devices()[0].device_kind.lower()
    except Exception:
        return 0
    for gen in (7, 6, 5, 4, 3, 2):
        if f"v{gen}" in kind or f"tpu{gen}" in kind:
            return gen
    return 0


def _tpu_tuning():
    """(vmem_limit_bytes, q_tile, exp_in_bf16) tuned per TPU generation."""
    gen = _tpu_generation()
    try:
        vmem_cap = int(pltpu.get_tpu_info().vmem_capacity_bytes)
    except Exception:
        vmem_cap = (64 << 20) if gen >= 7 else ((128 << 20) if gen in (5, 6) else (64 << 20))
    vmem_limit = max(32 << 20, (vmem_cap * 3) // 4)  # ~48 MiB on v7x, ~96 MiB on v5e/v6e
    q_tile = 256 if gen >= 6 else 128                # 256-wide MXU on v6e/v7x, 128 on v5e
    exp_in_bf16 = gen >= 6                           # bf16 EUP only on v6e/v7x
    return vmem_limit, q_tile, exp_in_bf16


def _grid_invariant_spec(shape, index_map, single_buffer):
    """Single-buffer blocks that never change (or change only per batch) to save VMEM."""
    if single_buffer:
        buffered = getattr(pl, "Buffered", None)
        if buffered is not None:
            try:
                return pl.BlockSpec(shape, index_map, pipeline_mode=buffered(1))
            except Exception:
                pass
    return pl.BlockSpec(shape, index_map)


def _attention_block(x, params, n_heads, *, q_tile=None, kv_tile=512, kv_proj_tile=256,
                     use_pipeline_hints=True):
    B, T, D = x.shape
    assert D % n_heads == 0, "d_model must be divisible by n_heads"
    d_k = D // n_heads
    hidden = params["w1"].shape[1]
    f32, bf16 = jnp.float32, jnp.bfloat16

    vmem_limit, q_tile_hw, exp_in_bf16 = _tpu_tuning()
    if q_tile is None:
        q_tile = q_tile_hw

    TQ = T if T <= q_tile else q_tile
    TK = T if T <= kv_tile else kv_tile
    TT = T if T <= kv_proj_tile else kv_proj_tile
    assert T % TQ == 0 and T % TK == 0 and T % TT == 0, \
        "sequence length must be a multiple of the query / kv tiles"
    NQ, NT = T // TQ, T // TT

    x = x.astype(f32)
    scale = 1.0 / math.sqrt(d_k)

    # Host-side fusions: fold softmax scale into Wq/bq, fuse K|V weights into one matrix.
    # Matmul weights in bf16 (MXU-native, halves weight VMEM); LN params / biases in f32.
    ln1_g = params["ln1_g"].astype(f32)
    ln1_b = params["ln1_b"].astype(f32)
    wq = (params["wq"] * scale).astype(bf16)
    bq = (params["bq"] * scale).astype(f32)
    wkv = jnp.concatenate([params["wk"], params["wv"]], axis=1).astype(bf16)   # (D, 2D)
    bkv = jnp.concatenate([params["bk"], params["bv"]], axis=1).astype(f32)    # (1, 2D)
    wo = params["wo"].astype(bf16)
    bo = params["bo"].astype(f32)
    ln2_g = params["ln2_g"].astype(f32)
    ln2_b = params["ln2_b"].astype(f32)
    w1 = params["w1"].astype(bf16)
    b1 = params["b1"].astype(f32)
    w2 = params["w2"].astype(bf16)
    b2 = params["b2"].astype(f32)

    compiler_params = pltpu.CompilerParams(
        dimension_semantics=("parallel", "parallel"),
        vmem_limit_bytes=int(vmem_limit),
    )

    def inv(p):  # grid-invariant weight spec (single-buffered)
        zeros = (0,) * p.ndim
        return _grid_invariant_spec(p.shape, lambda b, t: zeros, use_pipeline_hints)

    # ------------- pass 1: LayerNorm1 + fused K|V projection, once per sequence -----------
    kv_weights = [ln1_g, ln1_b, wkv, bkv]
    k_heads, v_heads = pl.pallas_call(
        partial(kv_project_kernel, n_heads=n_heads, d_k=d_k),
        out_shape=(jax.ShapeDtypeStruct((B, n_heads, T, d_k), bf16),
                   jax.ShapeDtypeStruct((B, n_heads, T, d_k), bf16)),
        grid_spec=pltpu.PrefetchScalarGridSpec(
            num_scalar_prefetch=0,
            grid=(B, NT),
            in_specs=[pl.BlockSpec((1, TT, D), lambda b, t: (b, t, 0))]
                     + [inv(p) for p in kv_weights],
            out_specs=[pl.BlockSpec((1, n_heads, TT, d_k), lambda b, t: (b, 0, t, 0)),
                       pl.BlockSpec((1, n_heads, TT, d_k), lambda b, t: (b, 0, t, 0))]),
        compiler_params=compiler_params,
    )(x, *kv_weights)

    # ------------- pass 2: per-(batch, query-tile) attention + residuals + FFN -------------
    weights = [ln1_g, ln1_b, wq, bq, wo, bo, ln2_g, ln2_b, w1, b1, w2, b2]
    in_specs = (
        [pl.BlockSpec((1, TQ, D), lambda b, qi: (b, qi, 0)),                      # x rows
         _grid_invariant_spec((1, n_heads, T, d_k), lambda b, qi: (b, 0, 0, 0),   # K
                              use_pipeline_hints),
         _grid_invariant_spec((1, n_heads, T, d_k), lambda b, qi: (b, 0, 0, 0),   # V
                              use_pipeline_hints)]
        + [inv(p) for p in weights]
    )
    out_spec = pl.BlockSpec((1, TQ, D), lambda b, qi: (b, qi, 0))

    cost_estimate = None
    if use_pipeline_hints:
        try:
            flops = B * T * (4 * D * D + 4 * T * D + 4 * D * hidden)
            transcendentals = B * T * (n_heads * T + hidden)
            bytes_accessed = (2 * B * T * D * 4
                              + 2 * B * n_heads * T * d_k * 2
                              + sum(int(p.size) * p.dtype.itemsize for p in weights))
            cost_estimate = pl.CostEstimate(flops=int(flops),
                                            transcendentals=int(transcendentals),
                                            bytes_accessed=int(bytes_accessed))
        except Exception:
            cost_estimate = None

    kernel = partial(attention_block_kernel, n_heads=n_heads, d_k=d_k,
                     kv_tile=TK, exp_in_bf16=exp_in_bf16)
    return pl.pallas_call(
        kernel,
        out_shape=jax.ShapeDtypeStruct((B, T, D), f32),
        grid_spec=pltpu.PrefetchScalarGridSpec(
            num_scalar_prefetch=0,
            grid=(B, NQ),
            in_specs=in_specs,
            out_specs=out_spec),
        compiler_params=compiler_params,
        cost_estimate=cost_estimate,
    )(x, k_heads, v_heads, *weights)


def attention_block(x, params, n_heads, **kwargs):
    try:
        return jax.block_until_ready(
            _attention_block(x, params, n_heads, use_pipeline_hints=True, **kwargs))
    except Exception:
        # pl.Buffered(1) / pl.CostEstimate are perf-only hints; retry without them if this
        # jax version rejects them.
        return _attention_block(x, params, n_heads, use_pipeline_hints=False, **kwargs)


# --------------------------------------------------------------------------- reference
def reference(x, params, n_heads):
    """Pure-JAX (f32) mirror of the PyTorch AttentionBlock.forward (eval mode)."""
    B, T, D = x.shape
    d_k = D // n_heads

    def ln(z, g, b):
        m = jnp.mean(z, -1, keepdims=True)
        v = jnp.mean((z - m) ** 2, -1, keepdims=True)
        return (z - m) / jnp.sqrt(v + LN_EPS) * g + b

    h = ln(x, params["ln1_g"], params["ln1_b"])
    q = (h @ params["wq"] + params["bq"]).reshape(B, T, n_heads, d_k).transpose(0, 2, 1, 3)
    k = (h @ params["wk"] + params["bk"]).reshape(B, T, n_heads, d_k).transpose(0, 2, 1, 3)
    v = (h @ params["wv"] + params["bv"]).reshape(B, T, n_heads, d_k).transpose(0, 2, 1, 3)
    s = jnp.einsum("bhqd,bhkd->bhqk", q, k) / math.sqrt(d_k)
    p = jax.nn.softmax(s, axis=-1)
    ctx = jnp.einsum("bhqk,bhkd->bhqd", p, v).transpose(0, 2, 1, 3).reshape(B, T, D)
    x1 = x + (ctx @ params["wo"] + params["bo"])
    h2 = ln(x1, params["ln2_g"], params["ln2_b"])
    f = jax.nn.gelu(h2 @ params["w1"] + params["b1"], approximate=False)
    f = f @ params["w2"] + params["b2"]
    return x1 + f


if __name__ == "__main__":
    B, T, D, N_HEADS, HIDDEN = 2, 8, 32, 4, 64  # d_k = 8

    key = jax.random.PRNGKey(0)
    keys = jax.random.split(key, 17)

    def init(k, shape, scale):
        return (scale * jax.random.normal(k, shape)).astype(jnp.float32)

    params = dict(
        ln1_g=(1.0 + init(keys[0], (1, D), 0.1)).astype(jnp.float32),
        ln1_b=init(keys[1], (1, D), 0.1),
        wq=init(keys[2], (D, D), 0.05), bq=init(keys[3], (1, D), 0.01),
        wk=init(keys[4], (D, D), 0.05), bk=init(keys[5], (1, D), 0.01),
        wv=init(keys[6], (D, D), 0.05), bv=init(keys[7], (1, D), 0.01),
        wo=init(keys[8], (D, D), 0.05), bo=init(keys[9], (1, D), 0.01),
        ln2_g=(1.0 + init(keys[10], (1, D), 0.1)).astype(jnp.float32),
        ln2_b=init(keys[11], (1, D), 0.1),
        w1=init(keys[12], (D, HIDDEN), 0.05), b1=init(keys[13], (1, HIDDEN), 0.01),
        w2=init(keys[14], (HIDDEN, D), 0.05), b2=init(keys[15], (1, D), 0.01),
    )
    x = jax.random.normal(keys[16], (B, T, D), jnp.float32)

    out = attention_block(x, params, N_HEADS)
    out = jax.block_until_ready(out)

    ref = reference(x, params, N_HEADS)
    assert out.shape == (B, T, D), out.shape
    max_err = float(jnp.max(jnp.abs(out - ref)))
    # bf16 matmul operands (f32 accumulation) + approx reciprocals => bf16-level tolerance
    assert jnp.allclose(out, ref, rtol=2e-2, atol=2e-2), f"max abs err {max_err}"

    print("KERNEL_OK")
</pallas_src>

<mosaic_0001>
module attributes {stable_mosaic.version = 11 : i64} {
  func.func @kv_project_kernel(%arg0: i32, %arg1: i32, %arg2: memref<1x8x32xf32, #tpu.memory_space<vmem>>, %arg3: memref<1x32xf32, #tpu.memory_space<vmem>>, %arg4: memref<1x32xf32, #tpu.memory_space<vmem>>, %arg5: memref<32x64xbf16, #tpu.memory_space<vmem>>, %arg6: memref<1x64xf32, #tpu.memory_space<vmem>>, %arg7: memref<1x4x8x8xbf16, #tpu.memory_space<vmem>>, %arg8: memref<1x4x8x8xbf16, #tpu.memory_space<vmem>>) attributes {dimension_semantics = [#tpu.dimension_semantics<parallel>, #tpu.dimension_semantics<parallel>], iteration_bounds = array<i64: 2, 1>, scalar_prefetch = 0 : i64, scratch_operands = 0 : i64, tpu.core_type = #tpu.core_type<tc>, window_params = [{transform_indices = @transform_0, window_bounds = array<i64: 1, 8, 32>}, {pipeline_mode = #tpu.pipeline_mode<synchronous>, transform_indices = @transform_1, window_bounds = array<i64: 1, 32>}, {pipeline_mode = #tpu.pipeline_mode<synchronous>, transform_indices = @transform_2, window_bounds = array<i64: 1, 32>}, {pipeline_mode = #tpu.pipeline_mode<synchronous>, transform_indices = @transform_3, window_bounds = array<i64: 32, 64>}, {pipeline_mode = #tpu.pipeline_mode<synchronous>, transform_indices = @transform_4, window_bounds = array<i64: 1, 64>}, {transform_indices = @transform_5, window_bounds = array<i64: 1, 4, 8, 8>}, {transform_indices = @transform_6, window_bounds = array<i64: 1, 4, 8, 8>}]} {
    %c0 = arith.constant 0 : index
    %c0_0 = arith.constant 0 : index
    %c0_1 = arith.constant 0 : index
    %0 = vector.load %arg2[%c0, %c0_0, %c0_1] : memref<1x8x32xf32, #tpu.memory_space<vmem>>, vector<1x8x32xf32>
    %1 = vector.shape_cast %0 : vector<1x8x32xf32> to vector<8x32xf32>
    %c0_2 = arith.constant 0 : index
    %c0_3 = arith.constant 0 : index
    %2 = vector.load %arg3[%c0_2, %c0_3] : memref<1x32xf32, #tpu.memory_space<vmem>>, vector<1x32xf32>
    %c0_4 = arith.constant 0 : index
    %c0_5 = arith.constant 0 : index
    %3 = vector.load %arg4[%c0_4, %c0_5] : memref<1x32xf32, #tpu.memory_space<vmem>>, vector<1x32xf32>
    %cst = arith.constant dense<0.000000e+00> : vector<8xf32>
    %4 = vector.multi_reduction <add>, %1, %cst [1] : vector<8x32xf32> to vector<8xf32>
    %5 = vector.shape_cast %4 : vector<8xf32> to vector<8x1xf32>
    %cst_6 = arith.constant 3.200000e+01 : f32
    %6 = vector.broadcast %cst_6 : f32 to vector<8x1xf32>
    %7 = arith.divf %5, %6 : vector<8x1xf32>
    %8 = vector.broadcast %7 : vector<8x1xf32> to vector<8x32xf32>
    %9 = arith.subf %1, %8 : vector<8x32xf32>
    %10 = arith.mulf %9, %9 : vector<8x32xf32>
    %cst_7 = arith.constant dense<0.000000e+00> : vector<8xf32>
    %11 = vector.multi_reduction <add>, %10, %cst_7 [1] : vector<8x32xf32> to vector<8xf32>
    %12 = vector.shape_cast %11 : vector<8xf32> to vector<8x1xf32>
    %cst_8 = arith.constant 3.200000e+01 : f32
    %13 = vector.broadcast %cst_8 : f32 to vector<8x1xf32>
    %14 = arith.divf %12, %13 : vector<8x1xf32>
    %15 = vector.broadcast %7 : vector<8x1xf32> to vector<8x32xf32>
    %16 = arith.subf %1, %15 : vector<8x32xf32>
    %cst_9 = arith.constant 9.99999974E-6 : f32
    %17 = vector.broadcast %cst_9 : f32 to vector<8x1xf32>
    %18 = arith.addf %14, %17 : vector<8x1xf32>
    %19 = math.rsqrt %18 : vector<8x1xf32>
    %20 = vector.broadcast %19 : vector<8x1xf32> to vector<8x32xf32>
    %21 = arith.mulf %16, %20 : vector<8x32xf32>
    %22 = vector.broadcast %2 : vector<1x32xf32> to vector<8x32xf32>
    %23 = arith.mulf %21, %22 : vector<8x32xf32>
    %24 = vector.broadcast %3 : vector<1x32xf32> to vector<8x32xf32>
    %25 = arith.addf %23, %24 : vector<8x32xf32>
    %26 = arith.truncf %25 : vector<8x32xf32> to vector<8x32xbf16>
    %c0_10 = arith.constant 0 : index
    %c0_11 = arith.constant 0 : index
    %27 = vector.load %arg5[%c0_10, %c0_11] : memref<32x64xbf16, #tpu.memory_space<vmem>>, vector<32x64xbf16>
    %cst_12 = arith.constant dense<0.000000e+00> : vector<8x64xf32>
    %28 = tpu.matmul %26, %27, %cst_12 {dimension_numbers = #tpu.dot_dimension_numbers<[1], [0], [0], [1], [0, 0, 1, 1], [], []>} : vector<8x32xbf16>, vector<32x64xbf16>, vector<8x64xf32> -> vector<8x64xf32>
    %c0_13 = arith.constant 0 : index
    %c0_14 = arith.constant 0 : index
    %29 = vector.load %arg6[%c0_13, %c0_14] : memref<1x64xf32, #tpu.memory_space<vmem>>, vector<1x64xf32>
    %30 = vector.broadcast %29 : vector<1x64xf32> to vector<8x64xf32>
    %31 = arith.addf %28, %30 : vector<8x64xf32>
    %32 = vector.extract_strided_slice %31 {offsets = [0, 0], sizes = [8, 32], strides = [1, 1]} : vector<8x64xf32> to vector<8x32xf32>
    %33 = vector.shape_cast %32 : vector<8x32xf32> to vector<8x4x8xf32>
    %34 = vector.extract_strided_slice %31 {offsets = [0, 32], sizes = [8, 32], strides = [1, 1]} : vector<8x64xf32> to vector<8x32xf32>
    %35 = vector.shape_cast %34 : vector<8x32xf32> to vector<8x4x8xf32>
    %36 = tpu.transpose %33, [1, 0, 2] : vector<8x4x8xf32> -> vector<4x8x8xf32>
    %37 = arith.truncf %36 : vector<4x8x8xf32> to vector<4x8x8xbf16>
    %c0_15 = arith.constant 0 : index
    %c0_16 = arith.constant 0 : index
    %c0_17 = arith.constant 0 : index
    %c0_18 = arith.constant 0 : index
    %38 = vector.load %arg7[%c0_15, %c0_16, %c0_17, %c0_18] : memref<1x4x8x8xbf16, #tpu.memory_space<vmem>>, vector<1x4x8x8xbf16>
    %39 = vector.shape_cast %38 : vector<1x4x8x8xbf16> to vector<4x8x8xbf16>
    %40 = vector.shape_cast %37 : vector<4x8x8xbf16> to vector<1x4x8x8xbf16>
    tpu.vector_store %arg7[%c0_15, %c0_16, %c0_17, %c0_18], %40 {strides = array<i32>} : memref<1x4x8x8xbf16, #tpu.memory_space<vmem>>, vector<1x4x8x8xbf16>,
    %41 = tpu.transpose %35, [1, 0, 2] : vector<8x4x8xf32> -> vector<4x8x8xf32>
    %42 = arith.truncf %41 : vector<4x8x8xf32> to vector<4x8x8xbf16>
    %c0_19 = arith.constant 0 : index
    %c0_20 = arith.constant 0 : index
    %c0_21 = arith.constant 0 : index
    %c0_22 = arith.constant 0 : index
    %43 = vector.load %arg8[%c0_19, %c0_20, %c0_21, %c0_22] : memref<1x4x8x8xbf16, #tpu.memory_space<vmem>>, vector<1x4x8x8xbf16>
    %44 = vector.shape_cast %43 : vector<1x4x8x8xbf16> to vector<4x8x8xbf16>
    %45 = vector.shape_cast %42 : vector<4x8x8xbf16> to vector<1x4x8x8xbf16>
    tpu.vector_store %arg8[%c0_19, %c0_20, %c0_21, %c0_22], %45 {strides = array<i32>} : memref<1x4x8x8xbf16, #tpu.memory_space<vmem>>, vector<1x4x8x8xbf16>,
    return
  }
  func.func @transform_0(%arg0: i32, %arg1: i32) -> (i32, i32, i32) {
    %c0_i32 = arith.constant 0 : i32
    %c0_i32_0 = arith.constant 0 : i32
    return %arg0, %arg1, %c0_i32 : i32, i32, i32
  }
  func.func @transform_1(%arg0: i32, %arg1: i32) -> (i32, i32) {
    %c0_i32 = arith.constant 0 : i32
    %c0_i32_0 = arith.constant 0 : i32
    %c0_i32_1 = arith.constant 0 : i32
    return %c0_i32, %c0_i32_0 : i32, i32
  }
  func.func @transform_2(%arg0: i32, %arg1: i32) -> (i32, i32) {
    %c0_i32 = arith.constant 0 : i32
    %c0_i32_0 = arith.constant 0 : i32
    %c0_i32_1 = arith.constant 0 : i32
    return %c0_i32, %c0_i32_0 : i32, i32
  }
  func.func @transform_3(%arg0: i32, %arg1: i32) -> (i32, i32) {
    %c0_i32 = arith.constant 0 : i32
    %c0_i32_0 = arith.constant 0 : i32
    %c0_i32_1 = arith.constant 0 : i32
    return %c0_i32, %c0_i32_0 : i32, i32
  }
  func.func @transform_4(%arg0: i32, %arg1: i32) -> (i32, i32) {
    %c0_i32 = arith.constant 0 : i32
    %c0_i32_0 = arith.constant 0 : i32
    %c0_i32_1 = arith.constant 0 : i32
    return %c0_i32, %c0_i32_0 : i32, i32
  }
  func.func @transform_5(%arg0: i32, %arg1: i32) -> (i32, i32, i32, i32) {
    %c0_i32 = arith.constant 0 : i32
    %c0_i32_0 = arith.constant 0 : i32
    %c0_i32_1 = arith.constant 0 : i32
    return %arg0, %c0_i32, %arg1, %c0_i32_0 : i32, i32, i32, i32
  }
  func.func @transform_6(%arg0: i32, %arg1: i32) -> (i32, i32, i32, i32) {
    %c0_i32 = arith.constant 0 : i32
    %c0_i32_0 = arith.constant 0 : i32
    %c0_i32_1 = arith.constant 0 : i32
    return %arg0, %c0_i32, %arg1, %c0_i32_0 : i32, i32, i32, i32
  }
}

module attributes {stable_mosaic.version = 11 : i64} {
  func.func @kv_project_kernel(%arg0: i32, %arg1: i32, %arg2: memref<1x8x32xf32, #tpu.memory_space<vmem>>, %arg3: memref<1x32xf32, #tpu.memory_space<vmem>>, %arg4: memref<1x32xf32, #tpu.memory_space<vmem>>, %arg5: memref<32x64xbf16, #tpu.memory_space<vmem>>, %arg6: memref<1x64xf32, #tpu.memory_space<vmem>>, %arg7: memref<1x4x8x8xbf16, #tpu.memory_space<vmem>>, %arg8: memref<1x4x8x8xbf16, #tpu.memory_space<vmem>>) attributes {dimension_semantics = [#tpu.dimension_semantics<parallel>, #tpu.dimension_semantics<parallel>], iteration_bounds = array<i64: 2, 1>, scalar_prefetch = 0 : i64, scratch_operands = 0 : i64, tpu.core_type = #tpu.core_type<tc>, window_params = [{transform_indices = @transform_0, window_bounds = array<i64: 1, 8, 32>}, {pipeline_mode = #tpu.pipeline_mode<synchronous>, transform_indices = @transform_1, window_bounds = array<i64: 1, 32>}, {pipeline_mode = #tpu.pipeline_mode<synchronous>, transform_indices = @transform_2, window_bounds = array<i64: 1, 32>}, {pipeline_mode = #tpu.pipeline_mode<synchronous>, transform_indices = @transform_3, window_bounds = array<i64: 32, 64>}, {pipeline_mode = #tpu.pipeline_mode<synchronous>, transform_indices = @transform_4, window_bounds = array<i64: 1, 64>}, {transform_indices = @transform_5, window_bounds = array<i64: 1, 4, 8, 8>}, {transform_indices = @transform_6, window_bounds = array<i64: 1, 4, 8, 8>}]} {
    %c0 = arith.constant 0 : index
    %c0_0 = arith.constant 0 : index
    %c0_1 = arith.constant 0 : index
    %0 = vector.load %arg2[%c0, %c0_0, %c0_1] : memref<1x8x32xf32, #tpu.memory_space<vmem>>, vector<1x8x32xf32>
    %1 = vector.shape_cast %0 : vector<1x8x32xf32> to vector<8x32xf32>
    %c0_2 = arith.constant 0 : index
    %c0_3 = arith.constant 0 : index
    %2 = vector.load %arg3[%c0_2, %c0_3] : memref<1x32xf32, #tpu.memory_space<vmem>>, vector<1x32xf32>
    %c0_4 = arith.constant 0 : index
    %c0_5 = arith.constant 0 : index
    %3 = vector.load %arg4[%c0_4, %c0_5] : memref<1x32xf32, #tpu.memory_space<vmem>>, vector<1x32xf32>
    %cst = arith.constant dense<0.000000e+00> : vector<8xf32>
    %4 = vector.multi_reduction <add>, %1, %cst [1] : vector<8x32xf32> to vector<8xf32>
    %5 = vector.shape_cast %4 : vector<8xf32> to vector<8x1xf32>
    %cst_6 = arith.constant 3.200000e+01 : f32
    %6 = vector.broadcast %cst_6 : f32 to vector<8x1xf32>
    %7 = arith.divf %5, %6 : vector<8x1xf32>
    %8 = vector.broadcast %7 : vector<8x1xf32> to vector<8x32xf32>
    %9 = arith.subf %1, %8 : vector<8x32xf32>
    %10 = arith.mulf %9, %9 : vector<8x32xf32>
    %cst_7 = arith.constant dense<0.000000e+00> : vector<8xf32>
    %11 = vector.multi_reduction <add>, %10, %cst_7 [1] : vector<8x32xf32> to vector<8xf32>
    %12 = vector.shape_cast %11 : vector<8xf32> to vector<8x1xf32>
    %cst_8 = arith.constant 3.200000e+01 : f32
    %13 = vector.broadcast %cst_8 : f32 to vector<8x1xf32>
    %14 = arith.divf %12, %13 : vector<8x1xf32>
    %15 = vector.broadcast %7 : vector<8x1xf32> to vector<8x32xf32>
    %16 = arith.subf %1, %15 : vector<8x32xf32>
    %cst_9 = arith.constant 9.99999974E-6 : f32
    %17 = vector.broadcast %cst_9 : f32 to vector<8x1xf32>
    %18 = arith.addf %14, %17 : vector<8x1xf32>
    %19 = math.rsqrt %18 : vector<8x1xf32>
    %20 = vector.broadcast %19 : vector<8x1xf32> to vector<8x32xf32>
    %21 = arith.mulf %16, %20 : vector<8x32xf32>
    %22 = vector.broadcast %2 : vector<1x32xf32> to vector<8x32xf32>
    %23 = arith.mulf %21, %22 : vector<8x32xf32>
    %24 = vector.broadcast %3 : vector<1x32xf32> to vector<8x32xf32>
    %25 = arith.addf %23, %24 : vector<8x32xf32>
    %26 = arith.truncf %25 : vector<8x32xf32> to vector<8x32xbf16>
    %c0_10 = arith.constant 0 : index
    %c0_11 = arith.constant 0 : index
    %27 = vector.load %arg5[%c0_10, %c0_11] : memref<32x64xbf16, #tpu.memory_space<vmem>>, vector<32x64xbf16>
    %cst_12 = arith.constant dense<0.000000e+00> : vector<8x64xf32>
    %28 = tpu.matmul %26, %27, %cst_12 {dimension_numbers = #tpu.dot_dimension_numbers<[1], [0], [0], [1], [0, 0, 1, 1], [], []>} : vector<8x32xbf16>, vector<32x64xbf16>, vector<8x64xf32> -> vector<8x64xf32>
    %c0_13 = arith.constant 0 : index
    %c0_14 = arith.constant 0 : index
    %29 = vector.load %arg6[%c0_13, %c0_14] : memref<1x64xf32, #tpu.memory_space<vmem>>, vector<1x64xf32>
    %30 = vector.broadcast %29 : vector<1x64xf32> to vector<8x64xf32>
    %31 = arith.addf %28, %30 : vector<8x64xf32>
    %32 = vector.extract_strided_slice %31 {offsets = [0, 0], sizes = [8, 32], strides = [1, 1]} : vector<8x64xf32> to vector<8x32xf32>
    %33 = vector.shape_cast %32 : vector<8x32xf32> to vector<8x4x8xf32>
    %34 = vector.extract_strided_slice %31 {offsets = [0, 32], sizes = [8, 32], strides = [1, 1]} : vector<8x64xf32> to vector<8x32xf32>
    %35 = vector.shape_cast %34 : vector<8x32xf32> to vector<8x4x8xf32>
    %36 = tpu.transpose %33, [1, 0, 2] : vector<8x4x8xf32> -> vector<4x8x8xf32>
    %37 = arith.truncf %36 : vector<4x8x8xf32> to vector<4x8x8xbf16>
    %c0_15 = arith.constant 0 : index
    %c0_16 = arith.constant 0 : index
    %c0_17 = arith.constant 0 : index
    %c0_18 = arith.constant 0 : index
    %38 = vector.load %arg7[%c0_15, %c0_16, %c0_17, %c0_18] : memref<1x4x8x8xbf16, #tpu.memory_space<vmem>>, vector<1x4x8x8xbf16>
    %39 = vector.shape_cast %38 : vector<1x4x8x8xbf16> to vector<4x8x8xbf16>
    %40 = vector.shape_cast %37 : vector<4x8x8xbf16> to vector<1x4x8x8xbf16>
    tpu.vector_store %arg7[%c0_15, %c0_16, %c0_17, %c0_18], %40 {strides = array<i32>} : memref<1x4x8x8xbf16, #tpu.memory_space<vmem>>, vector<1x4x8x8xbf16>,
    %41 = tpu.transpose %35, [1, 0, 2] : vector<8x4x8xf32> -> vector<4x8x8xf32>
    %42 = arith.truncf %41 : vector<4x8x8xf32> to vector<4x8x8xbf16>
    %c0_19 = arith.constant 0 : index
    %c0_20 = arith.constant 0 : index
    %c0_21 = arith.constant 0 : index
    %c0_22 = arith.constant 0 : index
    %43 = vector.load %arg8[%c0_19, %c0_20, %c0_21, %c0_22] : memref<1x4x8x8xbf16, #tpu.memory_space<vmem>>, vector<1x4x8x8xbf16>
    %44 = vector.shape_cast %43 : vector<1x4x8x8xbf16> to vector<4x8x8xbf16>
    %45 = vector.shape_cast %42 : vector<4x8x8xbf16> to vector<1x4x8x8xbf16>
    tpu.vector_store %arg8[%c0_19, %c0_20, %c0_21, %c0_22], %45 {strides = array<i32>} : memref<1x4x8x8xbf16, #tpu.memory_space<vmem>>, vector<1x4x8x8xbf16>,
    return
  }
  func.func @transform_0(%arg0: i32, %arg1: i32) -> (i32, i32, i32) {
    %c0_i32 = arith.constant 0 : i32
    %c0_i32_0 = arith.constant 0 : i32
    return %arg0, %arg1, %c0_i32 : i32, i32, i32
  }
  func.func @transform_1(%arg0: i32, %arg1: i32) -> (i32, i32) {
    %c0_i32 = arith.constant 0 : i32
    %c0_i32_0 = arith.constant 0 : i32
    %c0_i32_1 = arith.constant 0 : i32
    return %c0_i32, %c0_i32_0 : i32, i32
  }
  func.func @transform_2(%arg0: i32, %arg1: i32) -> (i32, i32) {
    %c0_i32 = arith.constant 0 : i32
    %c0_i32_0 = arith.constant 0 : i32
    %c0_i32_1 = arith.constant 0 : i32
    return %c0_i32, %c0_i32_0 : i32, i32
  }
  func.func @transform_3(%arg0: i32, %arg1: i32) -> (i32, i32) {
    %c0_i32 = arith.constant 0 : i32
    %c0_i32_0 = arith.constant 0 : i32
    %c0_i32_1 = arith.constant 0 : i32
    return %c0_i32, %c0_i32_0 : i32, i32
  }
  func.func @transform_4(%arg0: i32, %arg1: i32) -> (i32, i32) {
    %c0_i32 = arith.constant 0 : i32
    %c0_i32_0 = arith.constant 0 : i32
    %c0_i32_1 = arith.constant 0 : i32
    return %c0_i32, %c0_i32_0 : i32, i32
  }
  func.func @transform_5(%arg0: i32, %arg1: i32) -> (i32, i32, i32, i32) {
    %c0_i32 = arith.constant 0 : i32
    %c0_i32_0 = arith.constant 0 : i32
    %c0_i32_1 = arith.constant 0 : i32
    return %arg0, %c0_i32, %arg1, %c0_i32_0 : i32, i32, i32, i32
  }
  func.func @transform_6(%arg0: i32, %arg1: i32) -> (i32, i32, i32, i32) {
    %c0_i32 = arith.constant 0 : i32
    %c0_i32_0 = arith.constant 0 : i32
    %c0_i32_1 = arith.constant 0 : i32
    return %arg0, %c0_i32, %arg1, %c0_i32_0 : i32, i32, i32, i32
  }
}

</mosaic_0001>

<bundles_post_ra>
// kernel: tpu_custom_call.1
= control target key start
LH: loop header
LB: loop body
LE: loop exit
PB: predicated region body
PF: predicated region fallthrough
CT: control target
= control target key end

     0   :  { %s1572_s0 = inlined_call_operand.hbm [shape: f32[2,8,32], index: 0, kind: input, shape index: {}]   ;;  %s1573_s1 = inlined_call_operand.vmem [shape: f32[1,32], index: 1, kind: input, shape index: {}]   ;;  %s1574_s2 = inlined_call_operand.vmem [shape: f32[1,32], index: 2, kind: input, shape index: {}]   ;;  %s1575_s3 = inlined_call_operand.hbm [shape: bf16[32,64], index: 3, kind: input, shape index: {}]   ;;  %s1576_s4 = inlined_call_operand.vmem [shape: f32[1,64], index: 4, kind: input, shape index: {}]   ;;  %s1577_s5 = inlined_call_operand.hbm [shape: bf16[2,4,8,8], index: 5, kind: output, shape index: {0}]   ;;  %s1578_s6 = inlined_call_operand.hbm [shape: bf16[2,4,8,8], index: 6, kind: output, shape index: {1}]  }
   0x1   :  { %1583 = sst [smem:[#allocation14_spill]] %s1575_s3 }
   0x2   :  { %12 = vsyncpa [#allocation3], 0 }
   0x3   :  { %14 = vsyncpa [#allocation3 + $0x1], 0 }
   0x4   :  { %15 = vsyncpa [#allocation6], 0 }
   0x5   :  { %16 = vsyncpa [#allocation4], 0 }
   0x6   :  { %18 = vsyncpa [#allocation4 + $0x1], 0 }
   0x7   :  { %19 = vsyncpa [#allocation9], 0 }
   0x8   :  { %21 = vsyncpa [#allocation9 + $0x1], 0  ;;  %s1254_s21 = smov 0   ;;  %s1256_s22 = smov 0  }
   0x9   :  { %s1258_s23 = smov 0   ;;  %s1260_s24 = smov 0  }
   0xa   :  { %s1262_s25 = smov 0   ;;  %s1264_s26 = smov 0  }
   0xb LB: > { %s888_s27 = sadd.s32 4294967295, %s1201_s26   ;;  %s889_s28 = sadd.s32 4294967294, %s1201_s26   ;;  %s1201_s26 = sphi %s1264_s26, %s27_s26   ;;  %s1197_s25 = sphi %s1262_s25, %s1604_s25   ;;  %s1193_s24 = sphi %s1260_s24, %s1603_s24   ;;  %s1189_s23 = sphi %s1258_s23, %s1602_s23   ;;  %s1185_s22 = sphi %s1256_s22, %s1601_s22   ;;  %s1181_s21 = sphi %s1254_s21, %s1600_s21  }
   0xc   : > { %p61_p0 = scmp.ne.s32.totalorder %s1185_s22, %s1181_s21  ;;  %p1288_p1 = scmp.eq.s32.totalorder %s888_s27, 0 }
   0xd   : > { %p1292_p2 = scmp.eq.s32.totalorder %s888_s27, 1  ;;  %p177_p3 = scmp.eq.s32.totalorder %s889_s28, 1 }
   0xe   : > { %s1584_s29 = scalar_select %p1288_p1, 1, 0 }
   0xf   : > { %s1585_s30 = scalar_select %p1292_p2, 1, 0 }
  0x10   : > { %p1298_p4 = por %p1288_p1, %p61_p0  ;;  %p890_p5 = scmp.ge.s32.totalorder %s1201_s26, 1 }
  0x11   : > { %p1303_p6 = por %p177_p3, %p61_p0  ;;  %p212_p7 = scmp.lt.s32.totalorder %s1201_s26, 3 }
  0x12   : > { %s1586_s7 = scalar_select %p1298_p4, 1, 0 }
  0x13   : > { %s1587_s8 = scalar_select %p1303_p6, 1, 0 }
  0x14   : > { %p1308_p8 = pnand %p890_p5, %p212_p7  ;;  %s1203_s10 = smov [#allocation5]  }
  0x15   : > { %s230_s11 = sshll.u32 %s1203_s10, 4  ;;  %s39_s13 = sadd.s32 1, %s1197_s25  ;;  %s231_s11 = int_to_ptr.vmem [resolvable:$true] %s230_s11 }
  0x16   : > { %s1588_s9 = scalar_select %p1308_p8, 1, 0 }
  0x17   : > { %p941_p9 = pneg %p1308_p8  ;;  %s1590_s3 = sld [smem:[#allocation14_spill]] }
  0x19   : > { %p1317_p11 = pnand %p941_p9, %p1288_p1 }
  0x1b   : > { %p1027_p13 = pneg %p1317_p11 }
  0x1d   : > { %s1025_s16 = scalar_lea.hbm %s1590_s3, 256 }
  0x1e   : > { %p1026_p12 = scmp.ne.s32.totalorder %s1590_s3, %s1025_s16  ;;  %p1032_p5 = scmp.lt.u32.totalorder %s1025_s16, %s1590_s3 }
  0x20   : > { %p1028_p0 = pnand %p1027_p13, %p1026_p12 }
  0x22   : > { %p1029_p3 = pneg %p1028_p0 }
  0x24   : > { %p1034_p7 = pnand %p1032_p5, %p1029_p3 }
  0x26   : > { %1037 = shalt.err (!%p1034_p7)
}
  0x27   : > { %s1038_s27 = scalar_lea.vmem %s231_s11, 256  ;;  %p1046_p1 = scmp.lt.s32.totalorder %s231_s11, %s231_s11 }
  0x28   : > { %p1039_p9 = scmp.ne.s32.totalorder %s231_s11, %s1038_s27  ;;  %p1047_p4 = scmp.lt.s32.totalorder %s1038_s27, %s1038_s27 }
  0x2a   : > { %p1041_p10 = pnand %p1039_p9, %p1027_p13  ;;  %p1048_p8 = por %p1047_p4, %p1046_p1 }
  0x2c   : > { %p1042_p6 = pneg %p1041_p10 }
  0x2e   : > { %p1049_p2 = pnand %p1048_p8, %p1042_p6 }
  0x30   : > { %1052 = shalt.err (!%p1049_p2)
}
  0x31   : > { %s1204_s28 = smov 64   ;;  %s1205_s10 = smov 4  }
  0x32   : > { %944 = dma.hbm_to_vmem [thread:$0]  (!%p1317_p11), %s1590_s3, 256, %s231_s11, [#allocation6], %s1204_s28, %s1204_s28, %s1205_s10  }
  0x33   : > { %p41_p1 = scmp.ge.s32.totalorder %s39_s13, 2  ;;  %s48_s16 = sadd.s32 1, %s1189_s23 }
  0x34   : > { %p55_p2 = scmp.ne.s32.totalorder %s1189_s23, %s1185_s22  ;;  %p56_p4 = scmp.eq.s32.totalorder %s1201_s26, 0 }
  0x35   : > { %s1606_s13 = smov (%p41_p1, %s39_s13), 0  ;;  %p1592_p8 = scmp.ne.s32.totalorder %s1585_s30, 0 }
  0x36   : > { %p1344_p6 = por %p56_p4, %p55_p2  ;;  %s43_s12 = ssub.s32 %s1197_s25, %s1606_s13 }
  0x37   : > { %p1350_p10 = por %p1592_p8, %p55_p2  ;;  %p957_p12 = scmp.lt.s32.totalorder %s1201_s26, 2 }
  0x38   : > { %p46_p11 = scmp.eq.s32.totalorder %s43_s12, 0  ;;  %s247_s11 = sand.u32 1, %s1189_s23  }
  0x39   : > { %s893_s19 = sshll.u32 %s247_s11, 3  ;;  %s894_s27 = sshll.u32 %s1197_s25, 7 }
  0x3a   : > { %s1359_s20 = scalar_select %p46_p11, %s1189_s23, %s48_s16  }
  0x3b   : > { %s1365_s14 = scalar_lea.hbm %s1572_s0, %s894_s27  ;;  %s251_s30 = scalar_lea.vmem [#allocation2], %s893_s19 }
  0x3c   : > { %s259_s15 = sshll.u32 %s251_s30, 4  ;;  %p1371_p13 = pnand %p957_p12, %p1344_p6  ;;  %s1367_s15 = int_to_ptr.vmem [resolvable:$true] %s259_s15 }
  0x3d   : > { %s248_s16 = scalar_lea.sflag [#allocation3], %s247_s11  ;;  %s1053_s3 = scalar_lea.hbm %s1365_s14, 128 }
  0x3e   : > { %p1054_p0 = scmp.ne.s32.totalorder %s1365_s14, %s1053_s3  ;;  %p1055_p3 = pneg %p1371_p13 }
  0x3f   : > { %s1058_s28 = scalar_lea.hbm %s1572_s0, 256  ;;  %p1059_p9 = scmp.lt.u32.totalorder %s1365_s14, %s1572_s0 }
  0x40   : > { %p1056_p5 = pnand %p1055_p3, %p1054_p0  ;;  %p1060_p1 = scmp.lt.u32.totalorder %s1058_s28, %s1053_s3 }
  0x41   : > { %p1062_p4 = scmp.lt.u32.totalorder %s1053_s3, %s1365_s14 }
  0x42   : > { %p1057_p7 = pneg %p1056_p5  ;;  %p1061_p2 = por %p1060_p1, %p1059_p9 }
  0x44   : > { %p1063_p6 = por %p1062_p4, %p1061_p2 }
  0x46   : > { %p1064_p8 = pnand %p1063_p6, %p1057_p7 }
  0x48   : > { %1067 = shalt.err (!%p1064_p8)
}
  0x49   : > { %s1068_s11 = scalar_lea.vmem %s1367_s15, 128  ;;  %s1206_s30 = smov [#allocation2]  }
  0x4a   : > { %p1069_p12 = scmp.ne.s32.totalorder %s1367_s15, %s1068_s11  ;;  %s1073_s19 = sshll.u32 %s1206_s30, 4  ;;  %s1074_s19 = int_to_ptr.vmem [resolvable:$false] %s1073_s19 }
  0x4b   : > { %s1075_s27 = scalar_lea.vmem %s1074_s19, 256  ;;  %p1076_p5 = scmp.lt.s32.totalorder %s1367_s15, %s1074_s19 }
  0x4c   : > { %p1071_p11 = pnand %p1069_p12, %p1055_p3  ;;  %p1077_p9 = scmp.lt.s32.totalorder %s1075_s27, %s1068_s11 }
  0x4e   : > { %p1072_p0 = pneg %p1071_p11  ;;  %p1078_p1 = por %p1077_p9, %p1076_p5 }
  0x50   : > { %p1079_p2 = pnand %p1078_p1, %p1072_p0 }
  0x52   : > { %1082 = shalt.err (!%p1079_p2)
}
  0x53   : > { %948 = dma.hbm_to_vmem [thread:$0]  (!%p1371_p13), %s1365_s14, 128, %s1367_s15, %s248_s16  }
  0x54   : > { %p1595_p7 = scmp.ne.s32.totalorder %s1588_s9, 0 }
  0x55   : > { %s1403_s3 = sand.u32 (!%p1595_p7), 1, %s1185_s22   ;;  %p1596_p3 = scmp.ne.s32.totalorder (!%p1595_p7), %s1586_s7, 0 }
  0x56   : > { %268 = sbr.rel (%p1595_p7) target bundleno = 900 (0x384), region = 40  ;;  %s896_s28 = sshll.u32 (!%p1595_p7), %s1403_s3, 3 }
  0x57   : > { %s271_s17 = scalar_lea.sflag (!%p1595_p7), [#allocation3], %s1403_s3  ;;  %s274_s10 = scalar_lea.vmem (!%p1595_p7), [#allocation2], %s896_s28 }
  0x5d   : > { %1164 = dma.done.wait (%p1596_p3), %s271_s17, 128  }
  0x5e   : > { %1166 = vsyncadd (%p1596_p3), %s271_s17, 4294967168  ;;  %p1597_p4 = scmp.ne.s32.totalorder %s1584_s29, 0 }
  0x60   : > { %1168 = dma.done.wait (%p1597_p4), [#allocation6], 256  }
  0x61   : > { %1170 = vsyncadd (%p1597_p4), [#allocation6], 4294967040  ;;  %vm316_vm0 = vcmask 261120   ;;  %v313_v0 = vld [vmem:[%s274_s10] sm:$0xff]  ;;  %v1021_v7 = vld [vmem:[#allocation5] sm:$0xff]   ;;  %v1207_v8 = vmov 0.0   ;;  %v427_v28 = vlaneseq }
  0x62   : > { %v317_v1 = vsel %vm316_vm0, %v313_v0, 0.0  ;;  %923 = vmatprep.subr.bf16.mxu0 %v1207_v8  ;;  %vm1208_vm1 = vmmov 0   ;;  %v1022_v9 = vld [vmem:[#allocation5 + $0x8] sm:$0xff]   ;;  %v900_v14 = vld [vmem:[%s1573_s1] ss:$0 sm:$0xff]  ;;  %s1209_s16 = smov 104  }
  0x63   : > { %318 = vadd.xlane.f32.xlu0 %v317_v1  ;;  %927 = vmatprep.mubr.msk.bf16.mxu0 %vm1208_vm1, %v1207_v8  ;;  %v901_v16 = vld [vmem:[%s1574_s2] ss:$0 sm:$0xff]  ;;  %s1210_s11 = smov 120   ;;  %s1211_s30 = smov 112   ;;  %v1213_v26 = vmov 1983009808  }
  0x64   : > { %924 = vmatpush3.bf16.msra.mxu0 %v1021_v7  ;;  %v902_v20 = vld [vmem:[%s1576_s4] ss:$0 sm:$0xff]  ;;  %s1212_s19 = smov 96   ;;  %v425_v27 = vunpack.c.l.s4 %v1213_v26  ;;  %v1214_v29 = vmov 1934713408   ;;  %v428_v32 = vshrl.u32 %v427_v28, 7 }
  0x65   : > { %925 = vmatprep.subr.bf16.mxu0 %v1207_v8  ;;  %v457_v30 = vunpack.c.l.s4 %v1214_v29  ;;  %s898_s27 = sshll.u32 %s1403_s3, 4  ;;  %s918_s28 = sshll.u32 %s1193_s24, 8  ;;  %vm642_vm2 = vcmask 60416  }
  0x66   : > { %v426_v31 = vunpack.c.0.s8 %v425_v27  ;;  %s304_s17 = scalar_lea.vmem [#allocation7], %s898_s27  ;;  %s1456_s9 = scalar_lea.hbm %s1577_s5, %s918_s28 }
  0x67   : > { %v458_v35 = vunpack.c.0.s8 %v457_v30  ;;  %s743_s10 = sshll.u32 %s304_s17, 4  ;;  %s724_s14 = scalar_lea.sflag [#allocation4], %s1403_s3  ;;  %s1458_s10 = int_to_ptr.vmem [resolvable:$true] %s743_s10 }
  0x68   : > { %926 = vmatpush3.bf16.msra.mxu0 %v1022_v9  ;;  %v1427_v36 = vsub.s32 %v426_v31, %v428_v32  ;;  %s1083_s15 = scalar_lea.vmem %s1458_s10, 256  ;;  %s1215_s12 = smov [#allocation7]  }
  0x69   : > { %v1429_v42 = vsub.s32 %v458_v35, %v428_v32  ;;  %p1084_p13 = scmp.ne.s32.totalorder %s1458_s10, %s1083_s15 }
  0x6b   : > { %p1085_p6 = pnand %p1084_p13, %p1350_p10 }
  0x6d   : > { %p1086_p8 = pneg %p1085_p6 }
  0xf0   : > { %v319_v2 = vpop.xlane.xlu0 %318 }
  0xf1   : > { %v321_v3 = vmul.f32 0.03125, %v319_v2 }
  0xf3   : > { %v322_v4 = vsub.f32 %v313_v0, %v321_v3 }
  0xf5   : > { %v323_v5 = vmul.f32 %v322_v4, %v322_v4 }
  0xf7   : > { %v324_v6 = vsel %vm316_vm0, %v323_v5, 0.0 }
  0xf8   : > { %325 = vadd.xlane.f32.xlu0 %v324_v6 }
 0x185   : > { %v326_v10 = vpop.xlane.xlu0 %325 }
 0x186   : > { %v327_v11 = vmul.f32 0.03125, %v326_v10 }
 0x188   : > { %v328_v12 = vadd.f32 1e-05, %v327_v11 }
 0x18a   : > { %1023 = vrsqrt.f32 %v328_v12 }
 0x194   : > { %v1024_v13 = vpop.eup %1023 }
 0x195   : > { %v330_v15 = vmul.f32 %v1024_v13, %v322_v4 }
 0x197   : > { %v337_v17 = vmul.f32 %v900_v14, %v330_v15 }
 0x199   : > { %v344_v18 = vadd.f32 %v901_v16, %v337_v17 }
 0x19b   : > { %v345_v19 = vpack.c.bf16 %v344_v18, %v344_v18 }
 0x19d   : > { %928 = vmatmul.mubr.msk.bf16.vlgmr.msra.gmra.mrb[0].mxu0 %vm316_vm0, %v345_v19 }
 0x270   : > { %v406_v21 = vpop.f32.mrb[0].mxu0 }
 0x271   : > { %v407_v22 = vadd.f32 %v902_v20, %v406_v21  ;;  %v929_v23 = vpop.f32.mrb[1].mxu0 }
 0x272   : > { %v409_v24 = vpop.f32.mrb[2].mxu0 }
 0x273   : > { %419 = vrot.lane.b32.xlu0 %v407_v22, %s1209_s16  ;;  %413 = vrot.lane.b32.xlu1 %v407_v22, %s1210_s11  ;;  %v930_v25 = vpop.f32.mrb[3].mxu0  ;;  %s1087_s16 = sshll.u32 %s1215_s12, 4  ;;  %s1088_s16 = int_to_ptr.vmem [resolvable:$false] %s1087_s16 }
 0x274   : > { %s1089_s11 = scalar_lea.vmem %s1088_s16, 512  ;;  %p1090_p12 = scmp.lt.s32.totalorder %s1458_s10, %s1088_s16 }
 0x275   : > { %p1091_p11 = scmp.lt.s32.totalorder %s1089_s11, %s1083_s15 }
 0x277   : > { %416 = vrot.lane.b32.xlu1 %v407_v22, %s1211_s30  ;;  %p1092_p0 = por %p1091_p11, %p1090_p12 }
 0x279   : > { %p1093_p5 = pnand %p1092_p0, %p1086_p8 }
 0x27b   : > { %490 = vrot.lane.b32.xlu1 %v407_v22, %s1212_s19 }
 0x2e5   : > { %v420_v33 = vpop.permute.xlu0 %419  ;;  %v414_v34 = vpop.permute.xlu1 %413 }
 0x2e6   : > { %492 = vrot.lane.b32.xlu1 %v414_v34, %s1212_s19  ;;  %v438_v37 = vcombine.low %v414_v34, %v420_v33  ;;  %v439_v38 = vcombine.high %v414_v34, %v420_v33 }
 0x2e8   : > { %v446_v43 = vrot.slane %v438_v37, %v1427_v36  ;;  %v453_v44 = vrot.slane %v439_v38, %v1427_v36 }
 0x2e9   : > { %v417_v39 = vpop.permute.xlu1 %416 }
 0x2ea   : > { %v422_v40 = vcombine.low %v407_v22, %v417_v39  ;;  %v423_v41 = vcombine.high %v407_v22, %v417_v39  ;;  %494 = vrot.lane.b32.xlu1 %v417_v39, %s1212_s19 }
 0x2ec   : > { %v430_v45 = vrot.slane %v422_v40, %v1427_v36  ;;  %v437_v46 = vrot.slane %v423_v41, %v1427_v36 }
 0x2ee   : > { %v454_v47 = vcombine.low %v430_v45, %v446_v43  ;;  %v455_v48 = vcombine.high %v430_v45, %v446_v43  ;;  %v470_v49 = vcombine.low %v437_v46, %v453_v44  ;;  %v471_v50 = vcombine.high %v437_v46, %v453_v44  ;;  %496 = vrot.lane.b32.xlu1 %v420_v33, %s1212_s19 }
 0x2f0   : > { %v462_v51 = vrot.slane %v454_v47, %v1429_v42  ;;  %v469_v52 = vrot.slane %v455_v48, %v1429_v42  ;;  %v478_v53 = vrot.slane %v470_v49, %v1429_v42  ;;  %v485_v54 = vrot.slane %v471_v50, %v1429_v42 }
 0x2f2   : > { %v570_v55 = vcombine.low %v462_v51, %v469_v52  ;;  %v906_v56 = vcombine.high %v462_v51, %v469_v52  ;;  %v586_v57 = vcombine.low %v478_v53, %v485_v54  ;;  %v907_v58 = vcombine.high %v478_v53, %v485_v54 }
 0x2f4   : > { %v577_v59 = vrot.slane %v570_v55, %v1427_v36  ;;  %v585_v60 = vrot.slane %v906_v56, %v1427_v36  ;;  %v593_v61 = vrot.slane %v586_v57, %v1427_v36  ;;  %v601_v62 = vrot.slane %v907_v58, %v1427_v36 }
 0x2f6   : > { %v602_v63 = vcombine.low %v577_v59, %v585_v60  ;;  %v603_v0 = vcombine.high %v577_v59, %v585_v60  ;;  %v618_v1 = vcombine.low %v593_v61, %v601_v62  ;;  %v619_v2 = vcombine.high %v593_v61, %v601_v62 }
 0x2f8   : > { %v610_v3 = vrot.slane %v602_v63, %v1429_v42  ;;  %v617_v4 = vrot.slane %v603_v0, %v1429_v42  ;;  %v626_v5 = vrot.slane %v618_v1, %v1429_v42  ;;  %v633_v6 = vrot.slane %v619_v2, %v1429_v42 }
 0x2fa   : > { %v634_v7 = vcombine.low %v610_v3, %v626_v5  ;;  %v635_v8 = vcombine.high %v610_v3, %v626_v5  ;;  %v636_v9 = vcombine.low %v617_v4, %v633_v6  ;;  %v637_v10 = vcombine.high %v617_v4, %v633_v6 }
 0x2fc   : > { %v638_v11 = vpack.c.bf16 %v634_v7, %v634_v7  ;;  %v639_v12 = vpack.c.bf16 %v635_v8, %v635_v8  ;;  %v640_v13 = vpack.c.bf16 %v636_v9, %v636_v9  ;;  %v641_v14 = vpack.c.bf16 %v637_v10, %v637_v10 }
 0x2fe   : > { %643 = vst.msk [vmem:[%s304_s17] sm:$0xf] %vm642_vm2, %v638_v11  ;;  %644 = vst.msk [vmem:[%s304_s17 + $0x4] sm:$0xf] %vm642_vm2, %v639_v12 }
 0x2ff   : > { %645 = vst.msk [vmem:[%s304_s17 + $0x8] sm:$0xf] %vm642_vm2, %v640_v13  ;;  %646 = vst.msk [vmem:[%s304_s17 + $0xc] sm:$0xf] %vm642_vm2, %v641_v14 }
 0x300   : > { %1096 = shalt.err (!%p1093_p5)
}
 0x301   : > { %s1097_s30 = scalar_lea.hbm %s1456_s9, 256  ;;  %s1101_s29 = scalar_lea.hbm %s1577_s5, 512 }
 0x302   : > { %p1098_p9 = scmp.ne.s32.totalorder %s1456_s9, %s1097_s30  ;;  %p1102_p7 = scmp.lt.u32.totalorder %s1456_s9, %s1577_s5 }
 0x303   : > { %p1103_p3 = scmp.lt.u32.totalorder %s1101_s29, %s1097_s30  ;;  %p1105_p13 = scmp.lt.u32.totalorder %s1097_s30, %s1456_s9 }
 0x304   : > { %p1099_p1 = pnand %p1098_p9, %p1350_p10 }
 0x305   : > { %p1104_p4 = por %p1103_p3, %p1102_p7 }
 0x306   : > { %p1100_p2 = pneg %p1099_p1 }
 0x307   : > { %p1106_p6 = por %p1105_p13, %p1104_p4 }
 0x309   : > { %p1107_p8 = pnand %p1106_p6, %p1100_p2 }
 0x30b   : > { %1110 = shalt.err (!%p1107_p8)
}
 0x30c   : > { %s1216_s15 = smov 64   ;;  %s1217_s16 = smov 4   ;;  %v491_v15 = vpop.permute.xlu1 %490 }
 0x30d   : > { %937 = dma.vmem_to_hbm [thread:$0]  (%p1350_p10), %s1458_s10, 256, %s1456_s9, %s724_s14, %s1216_s15, %s1216_s15, %s1217_s16  }
 0x30e   : > { %s311_s10 = scalar_lea.vmem [#allocation8], %s898_s27  ;;  %s1514_s30 = scalar_lea.hbm %s1578_s6, %s918_s28 }
 0x30f   : > { %s760_s9 = sshll.u32 %s311_s10, 4  ;;  %s729_s27 = scalar_lea.sflag [#allocation9], %s1403_s3  ;;  %s1516_s9 = int_to_ptr.vmem [resolvable:$true] %s760_s9 }
 0x310   : > { %s1111_s24 = scalar_lea.vmem %s1516_s9, 256  ;;  %s1218_s28 = smov [#allocation8]  }
 0x311   : > { %p1112_p12 = scmp.ne.s32.totalorder %s1516_s9, %s1111_s24  ;;  %s1115_s19 = sshll.u32 %s1218_s28, 4  ;;  %s1116_s19 = int_to_ptr.vmem [resolvable:$false] %s1115_s19 }
 0x312   : > { %s1117_s17 = scalar_lea.vmem %s1116_s19, 512  ;;  %p1118_p5 = scmp.lt.s32.totalorder %s1516_s9, %s1116_s19 }
 0x313   : > { %p1113_p11 = pnand %p1112_p12, %p1350_p10  ;;  %p1119_p9 = scmp.lt.s32.totalorder %s1117_s17, %s1111_s24 }
 0x315   : > { %p1114_p0 = pneg %p1113_p11  ;;  %p1120_p1 = por %p1119_p9, %p1118_p5 }
 0x317   : > { %p1121_p2 = pnand %p1120_p1, %p1114_p0 }
 0x358   : > { %v493_v16 = vpop.permute.xlu1 %492 }
 0x35c   : > { %v495_v17 = vpop.permute.xlu1 %494 }
 0x35d   : > { %v502_v18 = vcombine.low %v491_v15, %v495_v17  ;;  %v503_v19 = vcombine.high %v491_v15, %v495_v17 }
 0x35f   : > { %v510_v23 = vrot.slane %v502_v18, %v1427_v36  ;;  %v517_v24 = vrot.slane %v503_v19, %v1427_v36 }
 0x360   : > { %v497_v20 = vpop.permute.xlu1 %496 }
 0x361   : > { %v518_v21 = vcombine.low %v493_v16, %v497_v20  ;;  %v519_v22 = vcombine.high %v493_v16, %v497_v20 }
 0x363   : > { %v526_v25 = vrot.slane %v518_v21, %v1427_v36  ;;  %v533_v26 = vrot.slane %v519_v22, %v1427_v36 }
 0x365   : > { %v534_v27 = vcombine.low %v510_v23, %v526_v25  ;;  %v535_v28 = vcombine.high %v510_v23, %v526_v25  ;;  %v550_v29 = vcombine.low %v517_v24, %v533_v26  ;;  %v551_v30 = vcombine.high %v517_v24, %v533_v26 }
 0x367   : > { %v542_v31 = vrot.slane %v534_v27, %v1429_v42  ;;  %v549_v32 = vrot.slane %v535_v28, %v1429_v42  ;;  %v558_v33 = vrot.slane %v550_v29, %v1429_v42  ;;  %v565_v34 = vrot.slane %v551_v30, %v1429_v42 }
 0x369   : > { %v647_v35 = vcombine.low %v542_v31, %v549_v32  ;;  %v908_v37 = vcombine.high %v542_v31, %v549_v32  ;;  %v663_v38 = vcombine.low %v558_v33, %v565_v34  ;;  %v909_v39 = vcombine.high %v558_v33, %v565_v34 }
 0x36b   : > { %v654_v40 = vrot.slane %v647_v35, %v1427_v36  ;;  %v662_v41 = vrot.slane %v908_v37, %v1427_v36  ;;  %v670_v43 = vrot.slane %v663_v38, %v1427_v36  ;;  %v678_v44 = vrot.slane %v909_v39, %v1427_v36 }
 0x36d   : > { %v679_v45 = vcombine.low %v654_v40, %v662_v41  ;;  %v680_v46 = vcombine.high %v654_v40, %v662_v41  ;;  %v695_v47 = vcombine.low %v670_v43, %v678_v44  ;;  %v696_v48 = vcombine.high %v670_v43, %v678_v44 }
 0x36f   : > { %v687_v49 = vrot.slane %v679_v45, %v1429_v42  ;;  %v694_v50 = vrot.slane %v680_v46, %v1429_v42  ;;  %v703_v51 = vrot.slane %v695_v47, %v1429_v42  ;;  %v710_v52 = vrot.slane %v696_v48, %v1429_v42 }
 0x371   : > { %v711_v53 = vcombine.low %v687_v49, %v703_v51  ;;  %v712_v54 = vcombine.high %v687_v49, %v703_v51  ;;  %v713_v36 = vcombine.low %v694_v50, %v710_v52  ;;  %v714_v55 = vcombine.high %v694_v50, %v710_v52 }
 0x373   : > { %v715_v56 = vpack.c.bf16 %v711_v53, %v711_v53  ;;  %v716_v57 = vpack.c.bf16 %v712_v54, %v712_v54  ;;  %v717_v58 = vpack.c.bf16 %v713_v36, %v713_v36  ;;  %v718_v59 = vpack.c.bf16 %v714_v55, %v714_v55 }
 0x375   : > { %719 = vst.msk [vmem:[%s311_s10] sm:$0xf] %vm642_vm2, %v715_v56  ;;  %720 = vst.msk [vmem:[%s311_s10 + $0x4] sm:$0xf] %vm642_vm2, %v716_v57 }
 0x376   : > { %721 = vst.msk [vmem:[%s311_s10 + $0x8] sm:$0xf] %vm642_vm2, %v717_v58  ;;  %722 = vst.msk [vmem:[%s311_s10 + $0xc] sm:$0xf] %vm642_vm2, %v718_v59 }
 0x377   : > { %1124 = shalt.err (!%p1121_p2)
}
 0x378   : > { %s1125_s29 = scalar_lea.hbm %s1514_s30, 256  ;;  %s1129_s10 = scalar_lea.hbm %s1578_s6, 512 }
 0x379   : > { %p1126_p7 = scmp.ne.s32.totalorder %s1514_s30, %s1125_s29  ;;  %p1130_p13 = scmp.lt.u32.totalorder %s1514_s30, %s1578_s6 }
 0x37a   : > { %p1131_p6 = scmp.lt.u32.totalorder %s1129_s10, %s1125_s29  ;;  %p1133_p12 = scmp.lt.u32.totalorder %s1125_s29, %s1514_s30 }
 0x37b   : > { %p1127_p3 = pnand %p1126_p7, %p1350_p10 }
 0x37c   : > { %p1132_p8 = por %p1131_p6, %p1130_p13 }
 0x37d   : > { %p1128_p4 = pneg %p1127_p3 }
 0x37e   : > { %p1134_p11 = por %p1133_p12, %p1132_p8 }
 0x380   : > { %p1135_p0 = pnand %p1134_p11, %p1128_p4 }
 0x382   : > { %1138 = shalt.err (!%p1135_p0)
}
 0x383   : > { %938 = dma.vmem_to_hbm [thread:$0]  (%p1350_p10), %s1516_s9, 256, %s1514_s30, %s729_s27, %s1216_s15, %s1216_s15, %s1217_s16  }
 0x384 PF: > { %s775_s24 = sand.u32 1, %s1181_s21   ;;  %p1598_p5 = scmp.ne.s32.totalorder %s1587_s8, 0 }
 0x385   : > { %p1599_p9 = scmp.ge.s32.totalorder %s1201_s26, 2  ;;  %s776_s28 = scalar_lea.sflag [#allocation4], %s775_s24 }
 0x387   : > { %p950_p1 = pnand %p1599_p9, %p1598_p5 }
 0x389   : > { %1172 = dma.done.wait (!%p950_p1), %s776_s28, 256  }
 0x38a   : > { %1174 = vsyncadd (!%p950_p1), %s776_s28, 4294967040  ;;  %s785_s18 = scalar_lea.sflag [#allocation9], %s775_s24 }
 0x38b   : > { %1176 = dma.done.wait (!%p950_p1), %s785_s18, 256  }
 0x38c   : > { %1178 = vsyncadd (!%p950_p1), %s785_s18, 4294967040  ;;  %s27_s26 = sadd.s32 1, %s1201_s26   ;;  %s1600_s21 = smov %s1185_s22 }
 0x38d   : > { %p24_p2 = scmp.ge.s32.totalorder %s27_s26, 4   ;;  %s1601_s22 = smov %s1189_s23 }
 0x38e   : > { %s1602_s23 = smov %s1359_s20  ;;  %s1603_s24 = smov %s1197_s25 }
 0x38f   : > { %s1604_s25 = smov %s1606_s13  ;;  %26 = sbr.rel (!%p24_p2) target bundleno = 11 (0xb), region = 106 }
 0x396   :  { %790 = vsyncpa [#allocation3], 1 }
 0x397   :  { %792 = vsyncpa [#allocation3 + $0x1], 1 }
 0x398   :  { %793 = vsyncpa [#allocation6], 1 }
 0x399   :  { %794 = vsyncpa [#allocation4], 1 }
 0x39a   :  { %796 = vsyncpa [#allocation4 + $0x1], 1 }
 0x39b   :  { %797 = vsyncpa [#allocation9], 1 }
 0x39c   :  { %799 = vsyncpa [#allocation9 + $0x1], 1 }

// kernel: tpu_custom_call.1
= control target key start
LH: loop header
LB: loop body
LE: loop exit
PB: predicated region body
PF: predicated region fallthrough
CT: control target
= control target key end

     0   :  { %s1572_s0 = inlined_call_operand.hbm [shape: f32[2,8,32], index: 0, kind: input, shape index: {}]   ;;  %s1573_s1 = inlined_call_operand.vmem [shape: f32[1,32], index: 1, kind: input, shape index: {}]   ;;  %s1574_s2 = inlined_call_operand.vmem [shape: f32[1,32], index: 2, kind: input, shape index: {}]   ;;  %s1575_s3 = inlined_call_operand.hbm [shape: bf16[32,64], index: 3, kind: input, shape index: {}]   ;;  %s1576_s4 = inlined_call_operand.vmem [shape: f32[1,64], index: 4, kind: input, shape index: {}]   ;;  %s1577_s5 = inlined_call_operand.hbm [shape: bf16[2,4,8,8], index: 5, kind: output, shape index: {0}]   ;;  %s1578_s6 = inlined_call_operand.hbm [shape: bf16[2,4,8,8], index: 6, kind: output, shape index: {1}]  }
   0x1   :  { %1583 = sst [smem:[#allocation14_spill]] %s1575_s3 }
   0x2   :  { %12 = vsyncpa [#allocation3], 0 }
   0x3   :  { %14 = vsyncpa [#allocation3 + $0x1], 0 }
   0x4   :  { %15 = vsyncpa [#allocation6], 0 }
   0x5   :  { %16 = vsyncpa [#allocation4], 0 }
   0x6   :  { %18 = vsyncpa [#allocation4 + $0x1], 0 }
   0x7   :  { %19 = vsyncpa [#allocation9], 0 }
   0x8   :  { %21 = vsyncpa [#allocation9 + $0x1], 0  ;;  %s1254_s21 = smov 0   ;;  %s1256_s22 = smov 0  }
   0x9   :  { %s1258_s23 = smov 0   ;;  %s1260_s24 = smov 0  }
   0xa   :  { %s1262_s25 = smov 0   ;;  %s1264_s26 = smov 0  }
   0xb LB: > { %s888_s27 = sadd.s32 4294967295, %s1201_s26   ;;  %s889_s28 = sadd.s32 4294967294, %s1201_s26   ;;  %s1201_s26 = sphi %s1264_s26, %s27_s26   ;;  %s1197_s25 = sphi %s1262_s25, %s1604_s25   ;;  %s1193_s24 = sphi %s1260_s24, %s1603_s24   ;;  %s1189_s23 = sphi %s1258_s23, %s1602_s23   ;;  %s1185_s22 = sphi %s1256_s22, %s1601_s22   ;;  %s1181_s21 = sphi %s1254_s21, %s1600_s21  }
   0xc   : > { %p61_p0 = scmp.ne.s32.totalorder %s1185_s22, %s1181_s21  ;;  %p1288_p1 = scmp.eq.s32.totalorder %s888_s27, 0 }
   0xd   : > { %p1292_p2 = scmp.eq.s32.totalorder %s888_s27, 1  ;;  %p177_p3 = scmp.eq.s32.totalorder %s889_s28, 1 }
   0xe   : > { %s1584_s29 = scalar_select %p1288_p1, 1, 0 }
   0xf   : > { %s1585_s30 = scalar_select %p1292_p2, 1, 0 }
  0x10   : > { %p1298_p4 = por %p1288_p1, %p61_p0  ;;  %p890_p5 = scmp.ge.s32.totalorder %s1201_s26, 1 }
  0x11   : > { %p1303_p6 = por %p177_p3, %p61_p0  ;;  %p212_p7 = scmp.lt.s32.totalorder %s1201_s26, 3 }
  0x12   : > { %s1586_s7 = scalar_select %p1298_p4, 1, 0 }
  0x13   : > { %s1587_s8 = scalar_select %p1303_p6, 1, 0 }
  0x14   : > { %p1308_p8 = pnand %p890_p5, %p212_p7  ;;  %s1203_s10 = smov [#allocation5]  }
  0x15   : > { %s230_s11 = sshll.u32 %s1203_s10, 4  ;;  %s39_s13 = sadd.s32 1, %s1197_s25  ;;  %s231_s11 = int_to_ptr.vmem [resolvable:$true] %s230_s11 }
  0x16   : > { %s1588_s9 = scalar_select %p1308_p8, 1, 0 }
  0x17   : > { %p941_p9 = pneg %p1308_p8  ;;  %s1590_s3 = sld [smem:[#allocation14_spill]] }
  0x19   : > { %p1317_p11 = pnand %p941_p9, %p1288_p1 }
  0x1b   : > { %p1027_p13 = pneg %p1317_p11 }
  0x1d   : > { %s1025_s16 = scalar_lea.hbm %s1590_s3, 256 }
  0x1e   : > { %p1026_p12 = scmp.ne.s32.totalorder %s1590_s3, %s1025_s16  ;;  %p1032_p5 = scmp.lt.u32.totalorder %s1025_s16, %s1590_s3 }
  0x20   : > { %p1028_p0 = pnand %p1027_p13, %p1026_p12 }
  0x22   : > { %p1029_p3 = pneg %p1028_p0 }
  0x24   : > { %p1034_p7 = pnand %p1032_p5, %p1029_p3 }
  0x26   : > { %1037 = shalt.err (!%p1034_p7)
}
  0x27   : > { %s1038_s27 = scalar_lea.vmem %s231_s11, 256  ;;  %p1046_p1 = scmp.lt.s32.totalorder %s231_s11, %s231_s11 }
  0x28   : > { %p1039_p9 = scmp.ne.s32.totalorder %s231_s11, %s1038_s27  ;;  %p1047_p4 = scmp.lt.s32.totalorder %s1038_s27, %s1038_s27 }
  0x2a   : > { %p1041_p10 = pnand %p1039_p9, %p1027_p13  ;;  %p1048_p8 = por %p1047_p4, %p1046_p1 }
  0x2c   : > { %p1042_p6 = pneg %p1041_p10 }
  0x2e   : > { %p1049_p2 = pnand %p1048_p8, %p1042_p6 }
  0x30   : > { %1052 = shalt.err (!%p1049_p2)
}
  0x31   : > { %s1204_s28 = smov 64   ;;  %s1205_s10 = smov 4  }
  0x32   : > { %944 = dma.hbm_to_vmem [thread:$0]  (!%p1317_p11), %s1590_s3, 256, %s231_s11, [#allocation6], %s1204_s28, %s1204_s28, %s1205_s10  }
  0x33   : > { %p41_p1 = scmp.ge.s32.totalorder %s39_s13, 2  ;;  %s48_s16 = sadd.s32 1, %s1189_s23 }
  0x34   : > { %p55_p2 = scmp.ne.s32.totalorder %s1189_s23, %s1185_s22  ;;  %p56_p4 = scmp.eq.s32.totalorder %s1201_s26, 0 }
  0x35   : > { %s1606_s13 = smov (%p41_p1, %s39_s13), 0  ;;  %p1592_p8 = scmp.ne.s32.totalorder %s1585_s30, 0 }
  0x36   : > { %p1344_p6 = por %p56_p4, %p55_p2  ;;  %s43_s12 = ssub.s32 %s1197_s25, %s1606_s13 }
  0x37   : > { %p1350_p10 = por %p1592_p8, %p55_p2  ;;  %p957_p12 = scmp.lt.s32.totalorder %s1201_s26, 2 }
  0x38   : > { %p46_p11 = scmp.eq.s32.totalorder %s43_s12, 0  ;;  %s247_s11 = sand.u32 1, %s1189_s23  }
  0x39   : > { %s893_s19 = sshll.u32 %s247_s11, 3  ;;  %s894_s27 = sshll.u32 %s1197_s25, 7 }
  0x3a   : > { %s1359_s20 = scalar_select %p46_p11, %s1189_s23, %s48_s16  }
  0x3b   : > { %s1365_s14 = scalar_lea.hbm %s1572_s0, %s894_s27  ;;  %s251_s30 = scalar_lea.vmem [#allocation2], %s893_s19 }
  0x3c   : > { %s259_s15 = sshll.u32 %s251_s30, 4  ;;  %p1371_p13 = pnand %p957_p12, %p1344_p6  ;;  %s1367_s15 = int_to_ptr.vmem [resolvable:$true] %s259_s15 }
  0x3d   : > { %s248_s16 = scalar_lea.sflag [#allocation3], %s247_s11  ;;  %s1053_s3 = scalar_lea.hbm %s1365_s14, 128 }
  0x3e   : > { %p1054_p0 = scmp.ne.s32.totalorder %s1365_s14, %s1053_s3  ;;  %p1055_p3 = pneg %p1371_p13 }
  0x3f   : > { %s1058_s28 = scalar_lea.hbm %s1572_s0, 256  ;;  %p1059_p9 = scmp.lt.u32.totalorder %s1365_s14, %s1572_s0 }
  0x40   : > { %p1056_p5 = pnand %p1055_p3, %p1054_p0  ;;  %p1060_p1 = scmp.lt.u32.totalorder %s1058_s28, %s1053_s3 }
  0x41   : > { %p1062_p4 = scmp.lt.u32.totalorder %s1053_s3, %s1365_s14 }
  0x42   : > { %p1057_p7 = pneg %p1056_p5  ;;  %p1061_p2 = por %p1060_p1, %p1059_p9 }
  0x44   : > { %p1063_p6 = por %p1062_p4, %p1061_p2 }
  0x46   : > { %p1064_p8 = pnand %p1063_p6, %p1057_p7 }
  0x48   : > { %1067 = shalt.err (!%p1064_p8)
}
  0x49   : > { %s1068_s11 = scalar_lea.vmem %s1367_s15, 128  ;;  %s1206_s30 = smov [#allocation2]  }
  0x4a   : > { %p1069_p12 = scmp.ne.s32.totalorder %s1367_s15, %s1068_s11  ;;  %s1073_s19 = sshll.u32 %s1206_s30, 4  ;;  %s1074_s19 = int_to_ptr.vmem [resolvable:$false] %s1073_s19 }
  0x4b   : > { %s1075_s27 = scalar_lea.vmem %s1074_s19, 256  ;;  %p1076_p5 = scmp.lt.s32.totalorder %s1367_s15, %s1074_s19 }
  0x4c   : > { %p1071_p11 = pnand %p1069_p12, %p1055_p3  ;;  %p1077_p9 = scmp.lt.s32.totalorder %s1075_s27, %s1068_s11 }
  0x4e   : > { %p1072_p0 = pneg %p1071_p11  ;;  %p1078_p1 = por %p1077_p9, %p1076_p5 }
  0x50   : > { %p1079_p2 = pnand %p1078_p1, %p1072_p0 }
  0x52   : > { %1082 = shalt.err (!%p1079_p2)
}
  0x53   : > { %948 = dma.hbm_to_vmem [thread:$0]  (!%p1371_p13), %s1365_s14, 128, %s1367_s15, %s248_s16  }
  0x54   : > { %p1595_p7 = scmp.ne.s32.totalorder %s1588_s9, 0 }
  0x55   : > { %s1403_s3 = sand.u32 (!%p1595_p7), 1, %s1185_s22   ;;  %p1596_p3 = scmp.ne.s32.totalorder (!%p1595_p7), %s1586_s7, 0 }
  0x56   : > { %268 = sbr.rel (%p1595_p7) target bundleno = 900 (0x384), region = 40  ;;  %s896_s28 = sshll.u32 (!%p1595_p7), %s1403_s3, 3 }
  0x57   : > { %s271_s17 = scalar_lea.sflag (!%p1595_p7), [#allocation3], %s1403_s3  ;;  %s274_s10 = scalar_lea.vmem (!%p1595_p7), [#allocation2], %s896_s28 }
  0x5d   : > { %1164 = dma.done.wait (%p1596_p3), %s271_s17, 128  }
  0x5e   : > { %1166 = vsyncadd (%p1596_p3), %s271_s17, 4294967168  ;;  %p1597_p4 = scmp.ne.s32.totalorder %s1584_s29, 0 }
  0x60   : > { %1168 = dma.done.wait (%p1597_p4), [#allocation6], 256  }
  0x61   : > { %1170 = vsyncadd (%p1597_p4), [#allocation6], 4294967040  ;;  %vm316_vm0 = vcmask 261120   ;;  %v313_v0 = vld [vmem:[%s274_s10] sm:$0xff]  ;;  %v1021_v7 = vld [vmem:[#allocation5] sm:$0xff]   ;;  %v1207_v8 = vmov 0.0   ;;  %v427_v28 = vlaneseq }
  0x62   : > { %v317_v1 = vsel %vm316_vm0, %v313_v0, 0.0  ;;  %923 = vmatprep.subr.bf16.mxu0 %v1207_v8  ;;  %vm1208_vm1 = vmmov 0   ;;  %v1022_v9 = vld [vmem:[#allocation5 + $0x8] sm:$0xff]   ;;  %v900_v14 = vld [vmem:[%s1573_s1] ss:$0 sm:$0xff]  ;;  %s1209_s16 = smov 104  }
  0x63   : > { %318 = vadd.xlane.f32.xlu0 %v317_v1  ;;  %927 = vmatprep.mubr.msk.bf16.mxu0 %vm1208_vm1, %v1207_v8  ;;  %v901_v16 = vld [vmem:[%s1574_s2] ss:$0 sm:$0xff]  ;;  %s1210_s11 = smov 120   ;;  %s1211_s30 = smov 112   ;;  %v1213_v26 = vmov 1983009808  }
  0x64   : > { %924 = vmatpush3.bf16.msra.mxu0 %v1021_v7  ;;  %v902_v20 = vld [vmem:[%s1576_s4] ss:$0 sm:$0xff]  ;;  %s1212_s19 = smov 96   ;;  %v425_v27 = vunpack.c.l.s4 %v1213_v26  ;;  %v1214_v29 = vmov 1934713408   ;;  %v428_v32 = vshrl.u32 %v427_v28, 7 }
  0x65   : > { %925 = vmatprep.subr.bf16.mxu0 %v1207_v8  ;;  %v457_v30 = vunpack.c.l.s4 %v1214_v29  ;;  %s898_s27 = sshll.u32 %s1403_s3, 4  ;;  %s918_s28 = sshll.u32 %s1193_s24, 8  ;;  %vm642_vm2 = vcmask 60416  }
  0x66   : > { %v426_v31 = vunpack.c.0.s8 %v425_v27  ;;  %s304_s17 = scalar_lea.vmem [#allocation7], %s898_s27  ;;  %s1456_s9 = scalar_lea.hbm %s1577_s5, %s918_s28 }
  0x67   : > { %v458_v35 = vunpack.c.0.s8 %v457_v30  ;;  %s743_s10 = sshll.u32 %s304_s17, 4  ;;  %s724_s14 = scalar_lea.sflag [#allocation4], %s1403_s3  ;;  %s1458_s10 = int_to_ptr.vmem [resolvable:$true] %s743_s10 }
  0x68   : > { %926 = vmatpush3.bf16.msra.mxu0 %v1022_v9  ;;  %v1427_v36 = vsub.s32 %v426_v31, %v428_v32  ;;  %s1083_s15 = scalar_lea.vmem %s1458_s10, 256  ;;  %s1215_s12 = smov [#allocation7]  }
  0x69   : > { %v1429_v42 = vsub.s32 %v458_v35, %v428_v32  ;;  %p1084_p13 = scmp.ne.s32.totalorder %s1458_s10, %s1083_s15 }
  0x6b   : > { %p1085_p6 = pnand %p1084_p13, %p1350_p10 }
  0x6d   : > { %p1086_p8 = pneg %p1085_p6 }
  0xf0   : > { %v319_v2 = vpop.xlane.xlu0 %318 }
  0xf1   : > { %v321_v3 = vmul.f32 0.03125, %v319_v2 }
  0xf3   : > { %v322_v4 = vsub.f32 %v313_v0, %v321_v3 }
  0xf5   : > { %v323_v5 = vmul.f32 %v322_v4, %v322_v4 }
  0xf7   : > { %v324_v6 = vsel %vm316_vm0, %v323_v5, 0.0 }
  0xf8   : > { %325 = vadd.xlane.f32.xlu0 %v324_v6 }
 0x185   : > { %v326_v10 = vpop.xlane.xlu0 %325 }
 0x186   : > { %v327_v11 = vmul.f32 0.03125, %v326_v10 }
 0x188   : > { %v328_v12 = vadd.f32 1e-05, %v327_v11 }
 0x18a   : > { %1023 = vrsqrt.f32 %v328_v12 }
 0x194   : > { %v1024_v13 = vpop.eup %1023 }
 0x195   : > { %v330_v15 = vmul.f32 %v1024_v13, %v322_v4 }
 0x197   : > { %v337_v17 = vmul.f32 %v900_v14, %v330_v15 }
 0x199   : > { %v344_v18 = vadd.f32 %v901_v16, %v337_v17 }
 0x19b   : > { %v345_v19 = vpack.c.bf16 %v344_v18, %v344_v18 }
 0x19d   : > { %928 = vmatmul.mubr.msk.bf16.vlgmr.msra.gmra.mrb[0].mxu0 %vm316_vm0, %v345_v19 }
 0x270   : > { %v406_v21 = vpop.f32.mrb[0].mxu0 }
 0x271   : > { %v407_v22 = vadd.f32 %v902_v20, %v406_v21  ;;  %v929_v23 = vpop.f32.mrb[1].mxu0 }
 0x272   : > { %v409_v24 = vpop.f32.mrb[2].mxu0 }
 0x273   : > { %419 = vrot.lane.b32.xlu0 %v407_v22, %s1209_s16  ;;  %413 = vrot.lane.b32.xlu1 %v407_v22, %s1210_s11  ;;  %v930_v25 = vpop.f32.mrb[3].mxu0  ;;  %s1087_s16 = sshll.u32 %s1215_s12, 4  ;;  %s1088_s16 = int_to_ptr.vmem [resolvable:$false] %s1087_s16 }
 0x274   : > { %s1089_s11 = scalar_lea.vmem %s1088_s16, 512  ;;  %p1090_p12 = scmp.lt.s32.totalorder %s1458_s10, %s1088_s16 }
 0x275   : > { %p1091_p11 = scmp.lt.s32.totalorder %s1089_s11, %s1083_s15 }
 0x277   : > { %416 = vrot.lane.b32.xlu1 %v407_v22, %s1211_s30  ;;  %p1092_p0 = por %p1091_p11, %p1090_p12 }
 0x279   : > { %p1093_p5 = pnand %p1092_p0, %p1086_p8 }
 0x27b   : > { %490 = vrot.lane.b32.xlu1 %v407_v22, %s1212_s19 }
 0x2e5   : > { %v420_v33 = vpop.permute.xlu0 %419  ;;  %v414_v34 = vpop.permute.xlu1 %413 }
 0x2e6   : > { %492 = vrot.lane.b32.xlu1 %v414_v34, %s1212_s19  ;;  %v438_v37 = vcombine.low %v414_v34, %v420_v33  ;;  %v439_v38 = vcombine.high %v414_v34, %v420_v33 }
 0x2e8   : > { %v446_v43 = vrot.slane %v438_v37, %v1427_v36  ;;  %v453_v44 = vrot.slane %v439_v38, %v1427_v36 }
 0x2e9   : > { %v417_v39 = vpop.permute.xlu1 %416 }
 0x2ea   : > { %v422_v40 = vcombine.low %v407_v22, %v417_v39  ;;  %v423_v41 = vcombine.high %v407_v22, %v417_v39  ;;  %494 = vrot.lane.b32.xlu1 %v417_v39, %s1212_s19 }
 0x2ec   : > { %v430_v45 = vrot.slane %v422_v40, %v1427_v36  ;;  %v437_v46 = vrot.slane %v423_v41, %v1427_v36 }
 0x2ee   : > { %v454_v47 = vcombine.low %v430_v45, %v446_v43  ;;  %v455_v48 = vcombine.high %v430_v45, %v446_v43  ;;  %v470_v49 = vcombine.low %v437_v46, %v453_v44  ;;  %v471_v50 = vcombine.high %v437_v46, %v453_v44  ;;  %496 = vrot.lane.b32.xlu1 %v420_v33, %s1212_s19 }
 0x2f0   : > { %v462_v51 = vrot.slane %v454_v47, %v1429_v42  ;;  %v469_v52 = vrot.slane %v455_v48, %v1429_v42  ;;  %v478_v53 = vrot.slane %v470_v49, %v1429_v42  ;;  %v485_v54 = vrot.slane %v471_v50, %v1429_v42 }
 0x2f2   : > { %v570_v55 = vcombine.low %v462_v51, %v469_v52  ;;  %v906_v56 = vcombine.high %v462_v51, %v469_v52  ;;  %v586_v57 = vcombine.low %v478_v53, %v485_v54  ;;  %v907_v58 = vcombine.high %v478_v53, %v485_v54 }
 0x2f4   : > { %v577_v59 = vrot.slane %v570_v55, %v1427_v36  ;;  %v585_v60 = vrot.slane %v906_v56, %v1427_v36  ;;  %v593_v61 = vrot.slane %v586_v57, %v1427_v36  ;;  %v601_v62 = vrot.slane %v907_v58, %v1427_v36 }
 0x2f6   : > { %v602_v63 = vcombine.low %v577_v59, %v585_v60  ;;  %v603_v0 = vcombine.high %v577_v59, %v585_v60  ;;  %v618_v1 = vcombine.low %v593_v61, %v601_v62  ;;  %v619_v2 = vcombine.high %v593_v61, %v601_v62 }
 0x2f8   : > { %v610_v3 = vrot.slane %v602_v63, %v1429_v42  ;;  %v617_v4 = vrot.slane %v603_v0, %v1429_v42  ;;  %v626_v5 = vrot.slane %v618_v1, %v1429_v42  ;;  %v633_v6 = vrot.slane %v619_v2, %v1429_v42 }
 0x2fa   : > { %v634_v7 = vcombine.low %v610_v3, %v626_v5  ;;  %v635_v8 = vcombine.high %v610_v3, %v626_v5  ;;  %v636_v9 = vcombine.low %v617_v4, %v633_v6  ;;  %v637_v10 = vcombine.high %v617_v4, %v633_v6 }
 0x2fc   : > { %v638_v11 = vpack.c.bf16 %v634_v7, %v634_v7  ;;  %v639_v12 = vpack.c.bf16 %v635_v8, %v635_v8  ;;  %v640_v13 = vpack.c.bf16 %v636_v9, %v636_v9  ;;  %v641_v14 = vpack.c.bf16 %v637_v10, %v637_v10 }
 0x2fe   : > { %643 = vst.msk [vmem:[%s304_s17] sm:$0xf] %vm642_vm2, %v638_v11  ;;  %644 = vst.msk [vmem:[%s304_s17 + $0x4] sm:$0xf] %vm642_vm2, %v639_v12 }
 0x2ff   : > { %645 = vst.msk [vmem:[%s304_s17 + $0x8] sm:$0xf] %vm642_vm2, %v640_v13  ;;  %646 = vst.msk [vmem:[%s304_s17 + $0xc] sm:$0xf] %vm642_vm2, %v641_v14 }
 0x300   : > { %1096 = shalt.err (!%p1093_p5)
}
 0x301   : > { %s1097_s30 = scalar_lea.hbm %s1456_s9, 256  ;;  %s1101_s29 = scalar_lea.hbm %s1577_s5, 512 }
 0x302   : > { %p1098_p9 = scmp.ne.s32.totalorder %s1456_s9, %s1097_s30  ;;  %p1102_p7 = scmp.lt.u32.totalorder %s1456_s9, %s1577_s5 }
 0x303   : > { %p1103_p3 = scmp.lt.u32.totalorder %s1101_s29, %s1097_s30  ;;  %p1105_p13 = scmp.lt.u32.totalorder %s1097_s30, %s1456_s9 }
 0x304   : > { %p1099_p1 = pnand %p1098_p9, %p1350_p10 }
 0x305   : > { %p1104_p4 = por %p1103_p3, %p1102_p7 }
 0x306   : > { %p1100_p2 = pneg %p1099_p1 }
 0x307   : > { %p1106_p6 = por %p1105_p13, %p1104_p4 }
 0x309   : > { %p1107_p8 = pnand %p1106_p6, %p1100_p2 }
 0x30b   : > { %1110 = shalt.err (!%p1107_p8)
}
 0x30c   : > { %s1216_s15 = smov 64   ;;  %s1217_s16 = smov 4   ;;  %v491_v15 = vpop.permute.xlu1 %490 }
 0x30d   : > { %937 = dma.vmem_to_hbm [thread:$0]  (%p1350_p10), %s1458_s10, 256, %s1456_s9, %s724_s14, %s1216_s15, %s1216_s15, %s1217_s16  }
 0x30e   : > { %s311_s10 = scalar_lea.vmem [#allocation8], %s898_s27  ;;  %s1514_s30 = scalar_lea.hbm %s1578_s6, %s918_s28 }
 0x30f   : > { %s760_s9 = sshll.u32 %s311_s10, 4  ;;  %s729_s27 = scalar_lea.sflag [#allocation9], %s1403_s3  ;;  %s1516_s9 = int_to_ptr.vmem [resolvable:$true] %s760_s9 }
 0x310   : > { %s1111_s24 = scalar_lea.vmem %s1516_s9, 256  ;;  %s1218_s28 = smov [#allocation8]  }
 0x311   : > { %p1112_p12 = scmp.ne.s32.totalorder %s1516_s9, %s1111_s24  ;;  %s1115_s19 = sshll.u32 %s1218_s28, 4  ;;  %s1116_s19 = int_to_ptr.vmem [resolvable:$false] %s1115_s19 }
 0x312   : > { %s1117_s17 = scalar_lea.vmem %s1116_s19, 512  ;;  %p1118_p5 = scmp.lt.s32.totalorder %s1516_s9, %s1116_s19 }
 0x313   : > { %p1113_p11 = pnand %p1112_p12, %p1350_p10  ;;  %p1119_p9 = scmp.lt.s32.totalorder %s1117_s17, %s1111_s24 }
 0x315   : > { %p1114_p0 = pneg %p1113_p11  ;;  %p1120_p1 = por %p1119_p9, %p1118_p5 }
 0x317   : > { %p1121_p2 = pnand %p1120_p1, %p1114_p0 }
 0x358   : > { %v493_v16 = vpop.permute.xlu1 %492 }
 0x35c   : > { %v495_v17 = vpop.permute.xlu1 %494 }
 0x35d   : > { %v502_v18 = vcombine.low %v491_v15, %v495_v17  ;;  %v503_v19 = vcombine.high %v491_v15, %v495_v17 }
 0x35f   : > { %v510_v23 = vrot.slane %v502_v18, %v1427_v36  ;;  %v517_v24 = vrot.slane %v503_v19, %v1427_v36 }
 0x360   : > { %v497_v20 = vpop.permute.xlu1 %496 }
 0x361   : > { %v518_v21 = vcombine.low %v493_v16, %v497_v20  ;;  %v519_v22 = vcombine.high %v493_v16, %v497_v20 }
 0x363   : > { %v526_v25 = vrot.slane %v518_v21, %v1427_v36  ;;  %v533_v26 = vrot.slane %v519_v22, %v1427_v36 }
 0x365   : > { %v534_v27 = vcombine.low %v510_v23, %v526_v25  ;;  %v535_v28 = vcombine.high %v510_v23, %v526_v25  ;;  %v550_v29 = vcombine.low %v517_v24, %v533_v26  ;;  %v551_v30 = vcombine.high %v517_v24, %v533_v26 }
 0x367   : > { %v542_v31 = vrot.slane %v534_v27, %v1429_v42  ;;  %v549_v32 = vrot.slane %v535_v28, %v1429_v42  ;;  %v558_v33 = vrot.slane %v550_v29, %v1429_v42  ;;  %v565_v34 = vrot.slane %v551_v30, %v1429_v42 }
 0x369   : > { %v647_v35 = vcombine.low %v542_v31, %v549_v32  ;;  %v908_v37 = vcombine.high %v542_v31, %v549_v32  ;;  %v663_v38 = vcombine.low %v558_v33, %v565_v34  ;;  %v909_v39 = vcombine.high %v558_v33, %v565_v34 }
 0x36b   : > { %v654_v40 = vrot.slane %v647_v35, %v1427_v36  ;;  %v662_v41 = vrot.slane %v908_v37, %v1427_v36  ;;  %v670_v43 = vrot.slane %v663_v38, %v1427_v36  ;;  %v678_v44 = vrot.slane %v909_v39, %v1427_v36 }
 0x36d   : > { %v679_v45 = vcombine.low %v654_v40, %v662_v41  ;;  %v680_v46 = vcombine.high %v654_v40, %v662_v41  ;;  %v695_v47 = vcombine.low %v670_v43, %v678_v44  ;;  %v696_v48 = vcombine.high %v670_v43, %v678_v44 }
 0x36f   : > { %v687_v49 = vrot.slane %v679_v45, %v1429_v42  ;;  %v694_v50 = vrot.slane %v680_v46, %v1429_v42  ;;  %v703_v51 = vrot.slane %v695_v47, %v1429_v42  ;;  %v710_v52 = vrot.slane %v696_v48, %v1429_v42 }
 0x371   : > { %v711_v53 = vcombine.low %v687_v49, %v703_v51  ;;  %v712_v54 = vcombine.high %v687_v49, %v703_v51  ;;  %v713_v36 = vcombine.low %v694_v50, %v710_v52  ;;  %v714_v55 = vcombine.high %v694_v50, %v710_v52 }
 0x373   : > { %v715_v56 = vpack.c.bf16 %v711_v53, %v711_v53  ;;  %v716_v57 = vpack.c.bf16 %v712_v54, %v712_v54  ;;  %v717_v58 = vpack.c.bf16 %v713_v36, %v713_v36  ;;  %v718_v59 = vpack.c.bf16 %v714_v55, %v714_v55 }
 0x375   : > { %719 = vst.msk [vmem:[%s311_s10] sm:$0xf] %vm642_vm2, %v715_v56  ;;  %720 = vst.msk [vmem:[%s311_s10 + $0x4] sm:$0xf] %vm642_vm2, %v716_v57 }
 0x376   : > { %721 = vst.msk [vmem:[%s311_s10 + $0x8] sm:$0xf] %vm642_vm2, %v717_v58  ;;  %722 = vst.msk [vmem:[%s311_s10 + $0xc] sm:$0xf] %vm642_vm2, %v718_v59 }
 0x377   : > { %1124 = shalt.err (!%p1121_p2)
}
 0x378   : > { %s1125_s29 = scalar_lea.hbm %s1514_s30, 256  ;;  %s1129_s10 = scalar_lea.hbm %s1578_s6, 512 }
 0x379   : > { %p1126_p7 = scmp.ne.s32.totalorder %s1514_s30, %s1125_s29  ;;  %p1130_p13 = scmp.lt.u32.totalorder %s1514_s30, %s1578_s6 }
 0x37a   : > { %p1131_p6 = scmp.lt.u32.totalorder %s1129_s10, %s1125_s29  ;;  %p1133_p12 = scmp.lt.u32.totalorder %s1125_s29, %s1514_s30 }
 0x37b   : > { %p1127_p3 = pnand %p1126_p7, %p1350_p10 }
 0x37c   : > { %p1132_p8 = por %p1131_p6, %p1130_p13 }
 0x37d   : > { %p1128_p4 = pneg %p1127_p3 }
 0x37e   : > { %p1134_p11 = por %p1133_p12, %p1132_p8 }
 0x380   : > { %p1135_p0 = pnand %p1134_p11, %p1128_p4 }
 0x382   : > { %1138 = shalt.err (!%p1135_p0)
}
 0x383   : > { %938 = dma.vmem_to_hbm [thread:$0]  (%p1350_p10), %s1516_s9, 256, %s1514_s30, %s729_s27, %s1216_s15, %s1216_s15, %s1217_s16  }
 0x384 PF: > { %s775_s24 = sand.u32 1, %s1181_s21   ;;  %p1598_p5 = scmp.ne.s32.totalorder %s1587_s8, 0 }
 0x385   : > { %p1599_p9 = scmp.ge.s32.totalorder %s1201_s26, 2  ;;  %s776_s28 = scalar_lea.sflag [#allocation4], %s775_s24 }
 0x387   : > { %p950_p1 = pnand %p1599_p9, %p1598_p5 }
 0x389   : > { %1172 = dma.done.wait (!%p950_p1), %s776_s28, 256  }
 0x38a   : > { %1174 = vsyncadd (!%p950_p1), %s776_s28, 4294967040  ;;  %s785_s18 = scalar_lea.sflag [#allocation9], %s775_s24 }
 0x38b   : > { %1176 = dma.done.wait (!%p950_p1), %s785_s18, 256  }
 0x38c   : > { %1178 = vsyncadd (!%p950_p1), %s785_s18, 4294967040  ;;  %s27_s26 = sadd.s32 1, %s1201_s26   ;;  %s1600_s21 = smov %s1185_s22 }
 0x38d   : > { %p24_p2 = scmp.ge.s32.totalorder %s27_s26, 4   ;;  %s1601_s22 = smov %s1189_s23 }
 0x38e   : > { %s1602_s23 = smov %s1359_s20  ;;  %s1603_s24 = smov %s1197_s25 }
 0x38f   : > { %s1604_s25 = smov %s1606_s13  ;;  %26 = sbr.rel (!%p24_p2) target bundleno = 11 (0xb), region = 106 }
 0x396   :  { %790 = vsyncpa [#allocation3], 1 }
 0x397   :  { %792 = vsyncpa [#allocation3 + $0x1], 1 }
 0x398   :  { %793 = vsyncpa [#allocation6], 1 }
 0x399   :  { %794 = vsyncpa [#allocation4], 1 }
 0x39a   :  { %796 = vsyncpa [#allocation4 + $0x1], 1 }
 0x39b   :  { %797 = vsyncpa [#allocation9], 1 }
 0x39c   :  { %799 = vsyncpa [#allocation9 + $0x1], 1 }

</bundles_post_ra>
